<compile_context>
chip_gen: v5e
topology: v5e:2x2
jax: 0.10.0
libtpu: 0.0.40
codegen_flags: <defaults>
</compile_context>

<pallas_src>
import functools

import jax
import jax.numpy as jnp
from jax.experimental import pallas as pl
from jax.experimental.pallas import tpu as pltpu


def _window_attention_kernel(*refs, num_heads, has_mask, precision):
    """Fused window attention for a block of BW windows.

    refs (in order):
      x_ref    : (BW, N, C)      input windows (streamed)
      wqkv_ref : (C, 3C)         qkv weight, (in, out), q-cols pre-scaled
      bqkv_ref : (1, 3C) f32     qkv bias, q-part pre-scaled
      bias_ref : (1, H, N, N) f32  relative-position bias (resident)
      mask_ref : (MB, N, N) f32  [only if has_mask] additive window mask
      wproj_ref: (C, C)          proj weight, (in, out)
      bproj_ref: (1, C) f32      proj bias
      o_ref    : (BW, N, C)      output
      acc_ref  : (BW, N, C)      VMEM scratch: merged head outputs
    """
    if has_mask:
        (x_ref, wqkv_ref, bqkv_ref, bias_ref, mask_ref,
         wproj_ref, bproj_ref, o_ref, acc_ref) = refs
    else:
        (x_ref, wqkv_ref, bqkv_ref, bias_ref,
         wproj_ref, bproj_ref, o_ref, acc_ref) = refs
        mask_ref = None

    BW, N, C = x_ref.shape
    H = num_heads
    hd = C // H
    cdt = acc_ref.dtype                       # compute dtype == input dtype

    # --- qkv projection on the MXU (qk scale already folded into q columns) ---
    x2d = x_ref[...].reshape(BW * N, C)       # layout-free merge when N % 8 == 0
    qkv2d = jnp.dot(x2d, wqkv_ref[...],
                    preferred_element_type=jnp.float32, precision=precision)
    qkv2d = qkv2d + bqkv_ref[...]             # f32 bias add
    # Cast back to the compute dtype right away: bf16 inputs get single-pass
    # MXU matmuls and the dominant (BW, N, 3C) intermediate is halved.
    qkv = qkv2d.astype(cdt).reshape(BW, N, 3 * C)

    for h in range(H):                        # H is small and static
        q = qkv[:, :, h * hd:(h + 1) * hd]                    # (BW, N, hd)
        k = qkv[:, :, C + h * hd:C + (h + 1) * hd]            # (BW, N, hd)
        v = qkv[:, :, 2 * C + h * hd:2 * C + (h + 1) * hd]    # (BW, N, hd)

        # scores: batched q @ k^T over the BW windows of this block
        attn = jax.lax.dot_general(
            q, k, dimension_numbers=(((2,), (2,)), ((0,), (0,))),
            preferred_element_type=jnp.float32, precision=precision)  # (BW,N,N)

        # per-head rel-pos bias slice: only 1/H of the bias is live at a time
        attn = attn + bias_ref[0, h, :, :][None]

        if mask_ref is not None:
            MB = mask_ref.shape[0]            # static: nW (<= BW) or BW (< nW)
            m = mask_ref[...]                 # (MB, N, N) f32, cheap VPU add
            if MB == BW:
                attn = attn + m
            else:
                # BW is a multiple of MB and blocks start at multiples of MB,
                # so window j of this block uses mask row j % MB.
                attn = (attn.reshape(BW // MB, MB, N, N)
                        + m[None]).reshape(BW, N, N)

        # --- softmax: statistics in f32, divide on the EUP ---
        mx = jnp.max(attn, axis=-1, keepdims=True)
        e = jnp.exp(attn - mx)                                # (BW, N, N) f32
        inv_l = pl.reciprocal(jnp.sum(e, axis=-1, keepdims=True), approx=True)

        if hd <= N:
            # normalize AFTER the PV matmul (fewer normalized elements)
            pv = jax.lax.dot_general(
                e.astype(cdt), v,
                dimension_numbers=(((2,), (1,)), ((0,), (0,))),
                preferred_element_type=jnp.float32, precision=precision)
            out_h = pv * inv_l                                # (BW, N, hd)
        else:
            p = (e * inv_l).astype(cdt)
            out_h = jax.lax.dot_general(
                p, v, dimension_numbers=(((2,), (1,)), ((0,), (0,))),
                preferred_element_type=jnp.float32, precision=precision)

        # accumulate this head into its lane slice of the VMEM scratch
        # (bounds live ranges; avoids the jnp.concatenate relayout)
        acc_ref[:, :, h * hd:(h + 1) * hd] = out_h.astype(cdt)

    # --- output projection ---
    y2d = jnp.dot(acc_ref[...].reshape(BW * N, C), wproj_ref[...],
                  preferred_element_type=jnp.float32, precision=precision)
    y2d = y2d + bproj_ref[...]
    o_ref[...] = y2d.reshape(BW, N, C).astype(o_ref.dtype)


def _vmem_bytes(bw, N, C, H, mask_rows, isz):
    """Rough VMEM working-set estimate for one grid step (bytes)."""
    io = 4 * bw * N * C * isz                 # x-in + out blocks, double-buffered
    inter = 4 * bw * N * C * isz              # qkv value (3x) + head-out scratch
    scores = 4 * bw * N * N * 4               # attn / exp f32 temporaries
    weights = 2 * (3 * C * C + C * C) * isz + 8 * C * 4
    biases = 2 * H * N * N * 4 + 2 * max(mask_rows, 1) * N * N * 4
    return io + inter + scores + weights + biases


def _pick_block_windows(B_, N, C, H, nW, isz, cap, vmem_budget):
    """Largest window-block size that fits the VMEM budget (and the mask)."""
    fixed = _vmem_bytes(0, N, C, H, nW, isz)
    per_win = max(_vmem_bytes(1, N, C, H, nW, isz) - fixed, 1)
    bw = max(1, min(cap, (vmem_budget - fixed) // per_win))
    if B_ >= 2:
        bw = min(bw, -(-B_ // 2))             # keep >= 2 grid steps (megacore/v7x)
    bw = max(1, min(bw, B_))
    if nW:                                    # shifted-window mask present
        if nW <= bw:
            bw = (bw // nW) * nW              # multiple of nW: mask block = (nW,N,N)
        else:
            for d in range(bw, 0, -1):        # largest divisor of nW that fits
                if nW % d == 0:
                    bw = d
                    break
    return int(bw)


def window_attention_1d(x, qkv_weight, qkv_bias, rel_pos_bias_table,
                        rel_pos_index, proj_weight, proj_bias, num_heads,
                        mask=None, *, qk_scale=None, block_windows=128,
                        precision=None):
    """Forward pass of WindowAttention1D (dropout p=0.0 -> identity).

    Args:
      x                  : (B_, N, C) windows (B_ = num_windows * B, N = window_size)
      qkv_weight         : (3C, C)   PyTorch Linear weight (out, in)
      qkv_bias           : (3C,)
      rel_pos_bias_table : (2*N - 1, num_heads)
      rel_pos_index      : (N, N) int32
      proj_weight        : (C, C)
      proj_bias          : (C,)
      num_heads          : int
      mask               : optional (nW, N, N) additive (0 / -inf) window mask
      precision          : optional lax.Precision for the matmuls (default MXU
                           precision; outputs match a f32 reference to ~5e-3).
    Returns:
      (B_, N, C) output, matching the PyTorch module.
    """
    B_, N, C = x.shape
    H = num_heads
    hd = C // H
    scale = qk_scale if qk_scale is not None else hd ** (-0.5)
    cdt = x.dtype
    isz = jnp.dtype(cdt).itemsize

    # --- parameter-only preprocessing (outside the kernel) ---
    # fold the qk scale into the q-columns of the qkv projection
    col_scale = jnp.concatenate(
        [jnp.full((C,), scale, dtype=jnp.float32),
         jnp.ones((2 * C,), dtype=jnp.float32)])
    wqkv_t = (qkv_weight.astype(jnp.float32).T * col_scale[None, :]).astype(cdt)
    bqkv = (qkv_bias.astype(jnp.float32) * col_scale).reshape(1, 3 * C)
    wproj_t = proj_weight.T.astype(cdt)
    bproj = proj_bias.astype(jnp.float32).reshape(1, C)

    # relative position bias -> (1, H, N, N) f32, resident across the grid
    bias = rel_pos_bias_table[rel_pos_index.reshape(-1)]
    bias = jnp.transpose(bias.reshape(N, N, H), (2, 0, 1))[None]
    bias = bias.astype(jnp.float32)

    # --- per-generation tile sizing (v7x: 64 MiB VMEM; v5e/v6e: 128 MiB) ---
    try:
        vmem_cap = int(pltpu.get_tpu_info().vmem_capacity_bytes)
    except Exception:
        vmem_cap = 64 << 20
    budget = min(32 << 20, vmem_cap // 2)

    nW = int(mask.shape[0]) if mask is not None else 0
    BW = _pick_block_windows(B_, N, C, H, nW, isz, block_windows, budget)

    in_specs = [
        pl.BlockSpec((BW, N, C), lambda b: (b, 0, 0)),       # x (streamed)
        pl.BlockSpec((C, 3 * C), lambda b: (0, 0)),          # qkv weight (resident)
        pl.BlockSpec((1, 3 * C), lambda b: (0, 0)),          # qkv bias
        pl.BlockSpec((1, H, N, N), lambda b: (0, 0, 0, 0)),  # rel-pos bias
    ]
    operands = [None, wqkv_t, bqkv, bias]                    # x set after padding

    if mask is not None:
        mask_f = mask.astype(jnp.float32)                    # (nW, N, N), no tiling
        if BW >= nW:                         # BW is a multiple of nW: whole mask
            in_specs.append(pl.BlockSpec((nW, N, N), lambda b: (0, 0, 0)))
        else:                                # BW divides nW: pick the right slice
            nblk = nW // BW
            in_specs.append(
                pl.BlockSpec((BW, N, N), lambda b: (b % nblk, 0, 0)))
        operands.append(mask_f)

    in_specs += [
        pl.BlockSpec((C, C), lambda b: (0, 0)),              # proj weight (resident)
        pl.BlockSpec((1, C), lambda b: (0, 0)),              # proj bias
    ]
    operands += [wproj_t, bproj]

    grid = pl.cdiv(B_, BW)
    B_pad = grid * BW
    if B_pad != B_:
        x = jnp.pad(x, ((0, B_pad - B_), (0, 0), (0, 0)))
    operands[0] = x

    vmem_limit = _vmem_bytes(BW, N, C, H, nW, isz) * 2 + (2 << 20)
    vmem_limit = int(min(max(vmem_limit, 16 << 20), int(vmem_cap * 0.9)))

    kernel = functools.partial(_window_attention_kernel, num_heads=H,
                               has_mask=mask is not None, precision=precision)

    out = pl.pallas_call(
        kernel,
        out_shape=jax.ShapeDtypeStruct((B_pad, N, C), cdt),
        grid=(grid,),
        in_specs=in_specs,
        out_specs=pl.BlockSpec((BW, N, C), lambda b: (b, 0, 0)),
        scratch_shapes=[pltpu.VMEM((BW, N, C), cdt)],        # head-out accumulator
        compiler_params=pltpu.CompilerParams(
            dimension_semantics=("parallel",),
            vmem_limit_bytes=vmem_limit),
    )(*operands)

    return out[:B_]


def _reference(x, qkv_weight, qkv_bias, rel_pos_bias_table, rel_pos_index,
               proj_weight, proj_bias, num_heads, mask=None, qk_scale=None):
    """Pure-JAX reference mirroring the PyTorch forward (dropout = identity)."""
    B_, N, C = x.shape
    H = num_heads
    hd = C // H
    scale = qk_scale if qk_scale is not None else hd ** (-0.5)

    qkv = x @ qkv_weight.T + qkv_bias
    qkv = jnp.transpose(qkv.reshape(B_, N, 3, H, hd), (2, 0, 3, 1, 4))
    q, k, v = qkv[0] * scale, qkv[1], qkv[2]                   # (B_, H, N, hd)
    attn = q @ jnp.swapaxes(k, -2, -1)                         # (B_, H, N, N)

    bias = rel_pos_bias_table[rel_pos_index.reshape(-1)]
    bias = jnp.transpose(bias.reshape(N, N, H), (2, 0, 1))     # (H, N, N)
    attn = attn + bias[None]

    if mask is not None:
        nW = mask.shape[0]
        attn = attn.reshape(B_ // nW, nW, H, N, N) + mask[None, :, None]
        attn = attn.reshape(B_, H, N, N)

    attn = jax.nn.softmax(attn, axis=-1)
    out = jnp.swapaxes(attn @ v, 1, 2).reshape(B_, N, C)
    return out @ proj_weight.T + proj_bias


if __name__ == "__main__":
    # Small shapes consistent with the module: dim=32, window_size=8, heads=4,
    # B=2 batches * nW=4 windows -> x is (8, 8, 32).
    B, nW, ws, dim, heads = 2, 4, 8, 32, 4
    B_, N, C = B * nW, ws, dim

    key = jax.random.PRNGKey(0)
    kx, kqw, kqb, kt, kpw, kpb, km = jax.random.split(key, 7)

    x = jax.random.normal(kx, (B_, N, C), dtype=jnp.float32)
    qkv_weight = 0.05 * jax.random.normal(kqw, (3 * C, C), dtype=jnp.float32)
    qkv_bias = 0.05 * jax.random.normal(kqb, (3 * C,), dtype=jnp.float32)
    rel_tab = 0.02 * jax.random.normal(kt, (2 * ws - 1, heads), dtype=jnp.float32)
    proj_weight = 0.05 * jax.random.normal(kpw, (C, C), dtype=jnp.float32)
    proj_bias = 0.05 * jax.random.normal(kpb, (C,), dtype=jnp.float32)

    # relative_position_index exactly as built in the PyTorch __init__
    coords = jnp.arange(ws)
    rel_pos_index = (coords[:, None] - coords[None, :] + ws - 1).astype(jnp.int32)

    # shifted-window style additive mask (0 / -100) per window, diagonal open
    mask_bits = jax.random.bernoulli(km, 0.25, (nW, N, N))
    mask = jnp.where(mask_bits, -100.0, 0.0).astype(jnp.float32)
    mask = jnp.where(jnp.eye(N, dtype=bool)[None], 0.0, mask)

    args = (x, qkv_weight, qkv_bias, rel_tab, rel_pos_index, proj_weight,
            proj_bias, heads)

    out_nomask = jax.block_until_ready(window_attention_1d(*args))
    out_masked = jax.block_until_ready(window_attention_1d(*args, mask=mask))
    # ragged / padded multi-step grid (BW=3 does not divide B_=8)
    out_ragged = jax.block_until_ready(
        window_attention_1d(*args, block_windows=3))
    # masked path with BW < nW exercises the sliced-mask index_map
    out_masked_small = jax.block_until_ready(
        window_attention_1d(*args, mask=mask, block_windows=2))

    with jax.default_matmul_precision("highest"):
        ref_nomask = _reference(*args)
        ref_masked = _reference(*args, mask=mask)

    def _check(name, got, want, atol=5e-3, rtol=5e-3):
        assert got.shape == want.shape, (name, got.shape, want.shape)
        err = float(jnp.max(jnp.abs(got - want)))
        assert jnp.allclose(got, want, atol=atol, rtol=rtol), (
            "%s mismatch, max abs err = %g" % (name, err))

    _check("no-mask", out_nomask, ref_nomask)
    _check("masked", out_masked, ref_masked)
    _check("ragged-block", out_ragged, ref_nomask)
    _check("masked-small-block", out_masked_small, ref_masked)

    print("KERNEL_OK")
</pallas_src>

<mosaic_0001>
module attributes {stable_mosaic.version = 11 : i64} {
  func.func @_window_attention_kernel(%arg0: i32, %arg1: memref<4x8x32xf32, #tpu.memory_space<vmem>>, %arg2: memref<32x96xf32, #tpu.memory_space<vmem>>, %arg3: memref<1x96xf32, #tpu.memory_space<vmem>>, %arg4: memref<1x4x8x8xf32, #tpu.memory_space<vmem>>, %arg5: memref<32x32xf32, #tpu.memory_space<vmem>>, %arg6: memref<1x32xf32, #tpu.memory_space<vmem>>, %arg7: memref<4x8x32xf32, #tpu.memory_space<vmem>>, %arg8: memref<4x8x32xf32, #tpu.memory_space<vmem>>) attributes {dimension_semantics = [#tpu.dimension_semantics<parallel>], iteration_bounds = array<i64: 2>, scalar_prefetch = 0 : i64, scratch_operands = 1 : i64, tpu.core_type = #tpu.core_type<tc>, window_params = [{transform_indices = @transform_0, window_bounds = array<i64: 4, 8, 32>}, {pipeline_mode = #tpu.pipeline_mode<synchronous>, transform_indices = @transform_1, window_bounds = array<i64: 32, 96>}, {pipeline_mode = #tpu.pipeline_mode<synchronous>, transform_indices = @transform_2, window_bounds = array<i64: 1, 96>}, {pipeline_mode = #tpu.pipeline_mode<synchronous>, transform_indices = @transform_3, window_bounds = array<i64: 1, 4, 8, 8>}, {pipeline_mode = #tpu.pipeline_mode<synchronous>, transform_indices = @transform_4, window_bounds = array<i64: 32, 32>}, {pipeline_mode = #tpu.pipeline_mode<synchronous>, transform_indices = @transform_5, window_bounds = array<i64: 1, 32>}, {transform_indices = @transform_6, window_bounds = array<i64: 4, 8, 32>}]} {
    %c0 = arith.constant 0 : index
    %c0_0 = arith.constant 0 : index
    %c0_1 = arith.constant 0 : index
    %0 = vector.load %arg1[%c0, %c0_0, %c0_1] : memref<4x8x32xf32, #tpu.memory_space<vmem>>, vector<4x8x32xf32>
    %1 = vector.shape_cast %0 : vector<4x8x32xf32> to vector<32x32xf32>
    %c0_2 = arith.constant 0 : index
    %c0_3 = arith.constant 0 : index
    %2 = vector.load %arg2[%c0_2, %c0_3] : memref<32x96xf32, #tpu.memory_space<vmem>>, vector<32x96xf32>
    %cst = arith.constant dense<0.000000e+00> : vector<32x96xf32>
    %3 = tpu.matmul %1, %2, %cst {dimension_numbers = #tpu.dot_dimension_numbers<[1], [0], [0], [1], [0, 0, 1, 1], [], []>} : vector<32x32xf32>, vector<32x96xf32>, vector<32x96xf32> -> vector<32x96xf32>
    %c0_4 = arith.constant 0 : index
    %c0_5 = arith.constant 0 : index
    %4 = vector.load %arg3[%c0_4, %c0_5] : memref<1x96xf32, #tpu.memory_space<vmem>>, vector<1x96xf32>
    %5 = vector.broadcast %4 : vector<1x96xf32> to vector<32x96xf32>
    %6 = arith.addf %3, %5 : vector<32x96xf32>
    %7 = vector.shape_cast %6 : vector<32x96xf32> to vector<4x8x96xf32>
    %8 = vector.extract_strided_slice %7 {offsets = [0, 0, 0], sizes = [4, 8, 8], strides = [1, 1, 1]} : vector<4x8x96xf32> to vector<4x8x8xf32>
    %9 = vector.extract_strided_slice %7 {offsets = [0, 0, 32], sizes = [4, 8, 8], strides = [1, 1, 1]} : vector<4x8x96xf32> to vector<4x8x8xf32>
    %10 = vector.extract_strided_slice %7 {offsets = [0, 0, 64], sizes = [4, 8, 8], strides = [1, 1, 1]} : vector<4x8x96xf32> to vector<4x8x8xf32>
    %cst_6 = arith.constant dense<0.000000e+00> : vector<4x8x8xf32>
    %11 = tpu.matmul %8, %9, %cst_6 {dimension_numbers = #tpu.dot_dimension_numbers<[2], [2], [1], [1], [0, 0, 0, 1, 1, 1], [0], [0]>} : vector<4x8x8xf32>, vector<4x8x8xf32>, vector<4x8x8xf32> -> vector<4x8x8xf32>
    %c0_7 = arith.constant 0 : index
    %c0_8 = arith.constant 0 : index
    %c0_9 = arith.constant 0 : index
    %c0_10 = arith.constant 0 : index
    %12 = vector.load %arg4[%c0_7, %c0_8, %c0_9, %c0_10] : memref<1x4x8x8xf32, #tpu.memory_space<vmem>>, vector<1x1x8x8xf32>
    %13 = vector.shape_cast %12 : vector<1x1x8x8xf32> to vector<8x8xf32>
    %14 = vector.shape_cast %13 : vector<8x8xf32> to vector<1x8x8xf32>
    %15 = vector.broadcast %14 : vector<1x8x8xf32> to vector<4x8x8xf32>
    %16 = arith.addf %11, %15 : vector<4x8x8xf32>
    %cst_11 = arith.constant dense<0xFF800000> : vector<4x8xf32>
    %17 = vector.multi_reduction <maximumf>, %16, %cst_11 [2] : vector<4x8x8xf32> to vector<4x8xf32>
    %18 = vector.shape_cast %17 : vector<4x8xf32> to vector<4x8x1xf32>
    %19 = vector.broadcast %18 : vector<4x8x1xf32> to vector<4x8x8xf32>
    %20 = arith.subf %16, %19 : vector<4x8x8xf32>
    %21 = math.exp %20 : vector<4x8x8xf32>
    %cst_12 = arith.constant dense<0.000000e+00> : vector<4x8xf32>
    %22 = vector.multi_reduction <add>, %21, %cst_12 [2] : vector<4x8x8xf32> to vector<4x8xf32>
    %23 = vector.shape_cast %22 : vector<4x8xf32> to vector<4x8x1xf32>
    %24 = tpu.reciprocal %23 {approx = true} : vector<4x8x1xf32> -> vector<4x8x1xf32>
    %cst_13 = arith.constant dense<0.000000e+00> : vector<4x8x8xf32>
    %25 = tpu.matmul %21, %10, %cst_13 {dimension_numbers = #tpu.dot_dimension_numbers<[2], [1], [1], [2], [0, 0, 0, 1, 1, 2], [0], [0]>} : vector<4x8x8xf32>, vector<4x8x8xf32>, vector<4x8x8xf32> -> vector<4x8x8xf32>
    %26 = vector.broadcast %24 : vector<4x8x1xf32> to vector<4x8x8xf32>
    %27 = arith.mulf %25, %26 : vector<4x8x8xf32>
    %c0_14 = arith.constant 0 : index
    %c0_15 = arith.constant 0 : index
    %c0_16 = arith.constant 0 : index
    %28 = vector.load %arg8[%c0_14, %c0_15, %c0_16] : memref<4x8x32xf32, #tpu.memory_space<vmem>>, vector<4x8x8xf32>
    tpu.vector_store %arg8[%c0_14, %c0_15, %c0_16], %27 {strides = array<i32>} : memref<4x8x32xf32, #tpu.memory_space<vmem>>, vector<4x8x8xf32>,
    %29 = vector.extract_strided_slice %7 {offsets = [0, 0, 8], sizes = [4, 8, 8], strides = [1, 1, 1]} : vector<4x8x96xf32> to vector<4x8x8xf32>
    %30 = vector.extract_strided_slice %7 {offsets = [0, 0, 40], sizes = [4, 8, 8], strides = [1, 1, 1]} : vector<4x8x96xf32> to vector<4x8x8xf32>
    %31 = vector.extract_strided_slice %7 {offsets = [0, 0, 72], sizes = [4, 8, 8], strides = [1, 1, 1]} : vector<4x8x96xf32> to vector<4x8x8xf32>
    %cst_17 = arith.constant dense<0.000000e+00> : vector<4x8x8xf32>
    %32 = tpu.matmul %29, %30, %cst_17 {dimension_numbers = #tpu.dot_dimension_numbers<[2], [2], [1], [1], [0, 0, 0, 1, 1, 1], [0], [0]>} : vector<4x8x8xf32>, vector<4x8x8xf32>, vector<4x8x8xf32> -> vector<4x8x8xf32>
    %c0_18 = arith.constant 0 : index
    %c1 = arith.constant 1 : index
    %c0_19 = arith.constant 0 : index
    %c0_20 = arith.constant 0 : index
    %33 = vector.load %arg4[%c0_18, %c1, %c0_19, %c0_20] : memref<1x4x8x8xf32, #tpu.memory_space<vmem>>, vector<1x1x8x8xf32>
    %34 = vector.shape_cast %33 : vector<1x1x8x8xf32> to vector<8x8xf32>
    %35 = vector.shape_cast %34 : vector<8x8xf32> to vector<1x8x8xf32>
    %36 = vector.broadcast %35 : vector<1x8x8xf32> to vector<4x8x8xf32>
    %37 = arith.addf %32, %36 : vector<4x8x8xf32>
    %cst_21 = arith.constant dense<0xFF800000> : vector<4x8xf32>
    %38 = vector.multi_reduction <maximumf>, %37, %cst_21 [2] : vector<4x8x8xf32> to vector<4x8xf32>
    %39 = vector.shape_cast %38 : vector<4x8xf32> to vector<4x8x1xf32>
    %40 = vector.broadcast %39 : vector<4x8x1xf32> to vector<4x8x8xf32>
    %41 = arith.subf %37, %40 : vector<4x8x8xf32>
    %42 = math.exp %41 : vector<4x8x8xf32>
    %cst_22 = arith.constant dense<0.000000e+00> : vector<4x8xf32>
    %43 = vector.multi_reduction <add>, %42, %cst_22 [2] : vector<4x8x8xf32> to vector<4x8xf32>
    %44 = vector.shape_cast %43 : vector<4x8xf32> to vector<4x8x1xf32>
    %45 = tpu.reciprocal %44 {approx = true} : vector<4x8x1xf32> -> vector<4x8x1xf32>
    %cst_23 = arith.constant dense<0.000000e+00> : vector<4x8x8xf32>
    %46 = tpu.matmul %42, %31, %cst_23 {dimension_numbers = #tpu.dot_dimension_numbers<[2], [1], [1], [2], [0, 0, 0, 1, 1, 2], [0], [0]>} : vector<4x8x8xf32>, vector<4x8x8xf32>, vector<4x8x8xf32> -> vector<4x8x8xf32>
    %47 = vector.broadcast %45 : vector<4x8x1xf32> to vector<4x8x8xf32>
    %48 = arith.mulf %46, %47 : vector<4x8x8xf32>
    %c0_24 = arith.constant 0 : index
    %c0_25 = arith.constant 0 : index
    %c8 = arith.constant 8 : index
    %49 = vector.load %arg8[%c0_24, %c0_25, %c8] : memref<4x8x32xf32, #tpu.memory_space<vmem>>, vector<4x8x8xf32>
    tpu.vector_store %arg8[%c0_24, %c0_25, %c8], %48 {strides = array<i32>} : memref<4x8x32xf32, #tpu.memory_space<vmem>>, vector<4x8x8xf32>,
    %50 = vector.extract_strided_slice %7 {offsets = [0, 0, 16], sizes = [4, 8, 8], strides = [1, 1, 1]} : vector<4x8x96xf32> to vector<4x8x8xf32>
    %51 = vector.extract_strided_slice %7 {offsets = [0, 0, 48], sizes = [4, 8, 8], strides = [1, 1, 1]} : vector<4x8x96xf32> to vector<4x8x8xf32>
    %52 = vector.extract_strided_slice %7 {offsets = [0, 0, 80], sizes = [4, 8, 8], strides = [1, 1, 1]} : vector<4x8x96xf32> to vector<4x8x8xf32>
    %cst_26 = arith.constant dense<0.000000e+00> : vector<4x8x8xf32>
    %53 = tpu.matmul %50, %51, %cst_26 {dimension_numbers = #tpu.dot_dimension_numbers<[2], [2], [1], [1], [0, 0, 0, 1, 1, 1], [0], [0]>} : vector<4x8x8xf32>, vector<4x8x8xf32>, vector<4x8x8xf32> -> vector<4x8x8xf32>
    %c0_27 = arith.constant 0 : index
    %c2 = arith.constant 2 : index
    %c0_28 = arith.constant 0 : index
    %c0_29 = arith.constant 0 : index
    %54 = vector.load %arg4[%c0_27, %c2, %c0_28, %c0_29] : memref<1x4x8x8xf32, #tpu.memory_space<vmem>>, vector<1x1x8x8xf32>
    %55 = vector.shape_cast %54 : vector<1x1x8x8xf32> to vector<8x8xf32>
    %56 = vector.shape_cast %55 : vector<8x8xf32> to vector<1x8x8xf32>
    %57 = vector.broadcast %56 : vector<1x8x8xf32> to vector<4x8x8xf32>
    %58 = arith.addf %53, %57 : vector<4x8x8xf32>
    %cst_30 = arith.constant dense<0xFF800000> : vector<4x8xf32>
    %59 = vector.multi_reduction <maximumf>, %58, %cst_30 [2] : vector<4x8x8xf32> to vector<4x8xf32>
    %60 = vector.shape_cast %59 : vector<4x8xf32> to vector<4x8x1xf32>
    %61 = vector.broadcast %60 : vector<4x8x1xf32> to vector<4x8x8xf32>
    %62 = arith.subf %58, %61 : vector<4x8x8xf32>
    %63 = math.exp %62 : vector<4x8x8xf32>
    %cst_31 = arith.constant dense<0.000000e+00> : vector<4x8xf32>
    %64 = vector.multi_reduction <add>, %63, %cst_31 [2] : vector<4x8x8xf32> to vector<4x8xf32>
    %65 = vector.shape_cast %64 : vector<4x8xf32> to vector<4x8x1xf32>
    %66 = tpu.reciprocal %65 {approx = true} : vector<4x8x1xf32> -> vector<4x8x1xf32>
    %cst_32 = arith.constant dense<0.000000e+00> : vector<4x8x8xf32>
    %67 = tpu.matmul %63, %52, %cst_32 {dimension_numbers = #tpu.dot_dimension_numbers<[2], [1], [1], [2], [0, 0, 0, 1, 1, 2], [0], [0]>} : vector<4x8x8xf32>, vector<4x8x8xf32>, vector<4x8x8xf32> -> vector<4x8x8xf32>
    %68 = vector.broadcast %66 : vector<4x8x1xf32> to vector<4x8x8xf32>
    %69 = arith.mulf %67, %68 : vector<4x8x8xf32>
    %c0_33 = arith.constant 0 : index
    %c0_34 = arith.constant 0 : index
    %c16 = arith.constant 16 : index
    %70 = vector.load %arg8[%c0_33, %c0_34, %c16] : memref<4x8x32xf32, #tpu.memory_space<vmem>>, vector<4x8x8xf32>
    tpu.vector_store %arg8[%c0_33, %c0_34, %c16], %69 {strides = array<i32>} : memref<4x8x32xf32, #tpu.memory_space<vmem>>, vector<4x8x8xf32>,
    %71 = vector.extract_strided_slice %7 {offsets = [0, 0, 24], sizes = [4, 8, 8], strides = [1, 1, 1]} : vector<4x8x96xf32> to vector<4x8x8xf32>
    %72 = vector.extract_strided_slice %7 {offsets = [0, 0, 56], sizes = [4, 8, 8], strides = [1, 1, 1]} : vector<4x8x96xf32> to vector<4x8x8xf32>
    %73 = vector.extract_strided_slice %7 {offsets = [0, 0, 88], sizes = [4, 8, 8], strides = [1, 1, 1]} : vector<4x8x96xf32> to vector<4x8x8xf32>
    %cst_35 = arith.constant dense<0.000000e+00> : vector<4x8x8xf32>
    %74 = tpu.matmul %71, %72, %cst_35 {dimension_numbers = #tpu.dot_dimension_numbers<[2], [2], [1], [1], [0, 0, 0, 1, 1, 1], [0], [0]>} : vector<4x8x8xf32>, vector<4x8x8xf32>, vector<4x8x8xf32> -> vector<4x8x8xf32>
    %c0_36 = arith.constant 0 : index
    %c3 = arith.constant 3 : index
    %c0_37 = arith.constant 0 : index
    %c0_38 = arith.constant 0 : index
    %75 = vector.load %arg4[%c0_36, %c3, %c0_37, %c0_38] : memref<1x4x8x8xf32, #tpu.memory_space<vmem>>, vector<1x1x8x8xf32>
    %76 = vector.shape_cast %75 : vector<1x1x8x8xf32> to vector<8x8xf32>
    %77 = vector.shape_cast %76 : vector<8x8xf32> to vector<1x8x8xf32>
    %78 = vector.broadcast %77 : vector<1x8x8xf32> to vector<4x8x8xf32>
    %79 = arith.addf %74, %78 : vector<4x8x8xf32>
    %cst_39 = arith.constant dense<0xFF800000> : vector<4x8xf32>
    %80 = vector.multi_reduction <maximumf>, %79, %cst_39 [2] : vector<4x8x8xf32> to vector<4x8xf32>
    %81 = vector.shape_cast %80 : vector<4x8xf32> to vector<4x8x1xf32>
    %82 = vector.broadcast %81 : vector<4x8x1xf32> to vector<4x8x8xf32>
    %83 = arith.subf %79, %82 : vector<4x8x8xf32>
    %84 = math.exp %83 : vector<4x8x8xf32>
    %cst_40 = arith.constant dense<0.000000e+00> : vector<4x8xf32>
    %85 = vector.multi_reduction <add>, %84, %cst_40 [2] : vector<4x8x8xf32> to vector<4x8xf32>
    %86 = vector.shape_cast %85 : vector<4x8xf32> to vector<4x8x1xf32>
    %87 = tpu.reciprocal %86 {approx = true} : vector<4x8x1xf32> -> vector<4x8x1xf32>
    %cst_41 = arith.constant dense<0.000000e+00> : vector<4x8x8xf32>
    %88 = tpu.matmul %84, %73, %cst_41 {dimension_numbers = #tpu.dot_dimension_numbers<[2], [1], [1], [2], [0, 0, 0, 1, 1, 2], [0], [0]>} : vector<4x8x8xf32>, vector<4x8x8xf32>, vector<4x8x8xf32> -> vector<4x8x8xf32>
    %89 = vector.broadcast %87 : vector<4x8x1xf32> to vector<4x8x8xf32>
    %90 = arith.mulf %88, %89 : vector<4x8x8xf32>
    %c0_42 = arith.constant 0 : index
    %c0_43 = arith.constant 0 : index
    %c24 = arith.constant 24 : index
    %91 = vector.load %arg8[%c0_42, %c0_43, %c24] : memref<4x8x32xf32, #tpu.memory_space<vmem>>, vector<4x8x8xf32>
    tpu.vector_store %arg8[%c0_42, %c0_43, %c24], %90 {strides = array<i32>} : memref<4x8x32xf32, #tpu.memory_space<vmem>>, vector<4x8x8xf32>,
    %c0_44 = arith.constant 0 : index
    %c0_45 = arith.constant 0 : index
    %c0_46 = arith.constant 0 : index
    %92 = vector.load %arg8[%c0_44, %c0_45, %c0_46] : memref<4x8x32xf32, #tpu.memory_space<vmem>>, vector<4x8x32xf32>
    %93 = vector.shape_cast %92 : vector<4x8x32xf32> to vector<32x32xf32>
    %c0_47 = arith.constant 0 : index
    %c0_48 = arith.constant 0 : index
    %94 = vector.load %arg5[%c0_47, %c0_48] : memref<32x32xf32, #tpu.memory_space<vmem>>, vector<32x32xf32>
    %cst_49 = arith.constant dense<0.000000e+00> : vector<32x32xf32>
    %95 = tpu.matmul %93, %94, %cst_49 {dimension_numbers = #tpu.dot_dimension_numbers<[1], [0], [0], [1], [0, 0, 1, 1], [], []>} : vector<32x32xf32>, vector<32x32xf32>, vector<32x32xf32> -> vector<32x32xf32>
    %c0_50 = arith.constant 0 : index
    %c0_51 = arith.constant 0 : index
    %96 = vector.load %arg6[%c0_50, %c0_51] : memref<1x32xf32, #tpu.memory_space<vmem>>, vector<1x32xf32>
    %97 = vector.broadcast %96 : vector<1x32xf32> to vector<32x32xf32>
    %98 = arith.addf %95, %97 : vector<32x32xf32>
    %99 = vector.shape_cast %98 : vector<32x32xf32> to vector<4x8x32xf32>
    %c0_52 = arith.constant 0 : index
    %c0_53 = arith.constant 0 : index
    %c0_54 = arith.constant 0 : index
    %100 = vector.load %arg7[%c0_52, %c0_53, %c0_54] : memref<4x8x32xf32, #tpu.memory_space<vmem>>, vector<4x8x32xf32>
    tpu.vector_store %arg7[%c0_52, %c0_53, %c0_54], %99 {strides = array<i32>} : memref<4x8x32xf32, #tpu.memory_space<vmem>>, vector<4x8x32xf32>,
    return
  }
  func.func @transform_0(%arg0: i32) -> (i32, i32, i32) {
    %c0_i32 = arith.constant 0 : i32
    %c0_i32_0 = arith.constant 0 : i32
    %c0_i32_1 = arith.constant 0 : i32
    return %arg0, %c0_i32, %c0_i32_0 : i32, i32, i32
  }
  func.func @transform_1(%arg0: i32) -> (i32, i32) {
    %c0_i32 = arith.constant 0 : i32
    %c0_i32_0 = arith.constant 0 : i32
    %c0_i32_1 = arith.constant 0 : i32
    return %c0_i32, %c0_i32_0 : i32, i32
  }
  func.func @transform_2(%arg0: i32) -> (i32, i32) {
    %c0_i32 = arith.constant 0 : i32
    %c0_i32_0 = arith.constant 0 : i32
    %c0_i32_1 = arith.constant 0 : i32
    return %c0_i32, %c0_i32_0 : i32, i32
  }
  func.func @transform_3(%arg0: i32) -> (i32, i32, i32, i32) {
    %c0_i32 = arith.constant 0 : i32
    %c0_i32_0 = arith.constant 0 : i32
    %c0_i32_1 = arith.constant 0 : i32
    %c0_i32_2 = arith.constant 0 : i32
    %c0_i32_3 = arith.constant 0 : i32
    return %c0_i32, %c0_i32_0, %c0_i32_1, %c0_i32_2 : i32, i32, i32, i32
  }
  func.func @transform_4(%arg0: i32) -> (i32, i32) {
    %c0_i32 = arith.constant 0 : i32
    %c0_i32_0 = arith.constant 0 : i32
    %c0_i32_1 = arith.constant 0 : i32
    return %c0_i32, %c0_i32_0 : i32, i32
  }
  func.func @transform_5(%arg0: i32) -> (i32, i32) {
    %c0_i32 = arith.constant 0 : i32
    %c0_i32_0 = arith.constant 0 : i32
    %c0_i32_1 = arith.constant 0 : i32
    return %c0_i32, %c0_i32_0 : i32, i32
  }
  func.func @transform_6(%arg0: i32) -> (i32, i32, i32) {
    %c0_i32 = arith.constant 0 : i32
    %c0_i32_0 = arith.constant 0 : i32
    %c0_i32_1 = arith.constant 0 : i32
    return %arg0, %c0_i32, %c0_i32_0 : i32, i32, i32
  }
}

</mosaic_0001>

<bundles_post_ra>
// kernel: tpu_custom_call.1
= control target key start
LH: loop header
LB: loop body
LE: loop exit
PB: predicated region body
PF: predicated region fallthrough
CT: control target
= control target key end

     0   :  { %11 = vsyncpa [#allocation4], 0  ;;  %s2656_s0 = inlined_call_operand.hbm [shape: f32[8,8,32], index: 0, kind: input, shape index: {}]   ;;  %s2657_s1 = inlined_call_operand.hbm [shape: f32[32,96], index: 1, kind: input, shape index: {}]   ;;  %s2658_s2 = inlined_call_operand.vmem [shape: f32[1,96], index: 2, kind: input, shape index: {}]   ;;  %s2659_s3 = inlined_call_operand.hbm [shape: f32[1,4,8,8], index: 3, kind: input, shape index: {}]   ;;  %s2660_s4 = inlined_call_operand.hbm [shape: f32[32,32], index: 4, kind: input, shape index: {}]   ;;  %s2661_s5 = inlined_call_operand.vmem [shape: f32[1,32], index: 5, kind: input, shape index: {}]   ;;  %s2662_s6 = inlined_call_operand.hbm [shape: f32[8,8,32], index: 6, kind: output, shape index: {}]  }
   0x1   :  { %13 = vsyncpa [#allocation4 + $0x1], 0 }
   0x2   :  { %14 = vsyncpa [#allocation7], 0 }
   0x3   :  { %15 = vsyncpa [#allocation10], 0 }
   0x4   :  { %16 = vsyncpa [#allocation5], 0 }
   0x5   :  { %18 = vsyncpa [#allocation5 + $0x1], 0  ;;  %s2187_s21 = smov 0   ;;  %s2189_s22 = smov 0  }
   0x6   :  { %s2191_s23 = smov 0   ;;  %s2193_s24 = smov 0  }
   0x7 LB: > { %s2208_s25 = sadd.s32 4294967295, %s2130_s24   ;;  %s1664_s26 = sadd.s32 4294967294, %s2130_s24   ;;  %s2130_s24 = sphi %s2193_s24, %s2677_s24   ;;  %s2126_s23 = sphi %s2191_s23, %s2676_s23   ;;  %s2122_s22 = sphi %s2189_s22, %s2675_s22   ;;  %s2118_s21 = sphi %s2187_s21, %s2674_s21  }
   0x8   : > { %p44_p0 = scmp.ne.s32.totalorder %s2122_s22, %s2118_s21  ;;  %p45_p1 = scmp.eq.s32.totalorder %s2208_s25, 0 }
   0x9   : > { %p173_p2 = scmp.eq.s32.totalorder %s2208_s25, 1  ;;  %p179_p3 = scmp.eq.s32.totalorder %s1664_s26, 1 }
   0xa   : > { %p2217_p4 = por %p45_p1, %p44_p0  ;;  %p1665_p5 = scmp.ge.s32.totalorder %s2130_s24, 1 }
   0xb   : > { %p2222_p6 = por %p179_p3, %p44_p0  ;;  %p186_p7 = scmp.lt.s32.totalorder %s2130_s24, 3 }
   0xc   : > { %s197_s7 = sshll.u32 %s2657_s1, 4  ;;  %s2132_s9 = smov [#allocation6]   ;;  %s198_s7 = int_to_ptr.hbm [resolvable:$true] %s197_s7 }
   0xd   : > { %p2230_p8 = pnand %p1665_p5, %p186_p7  ;;  %s199_s10 = sshll.u32 %s2132_s9, 4  ;;  %s200_s10 = int_to_ptr.vmem [resolvable:$true] %s199_s10 }
   0xe   : > { %s214_s14 = sshll.u32 %s2659_s3, 4  ;;  %s2663_s15 = smov 128   ;;  %s215_s14 = int_to_ptr.hbm [resolvable:$true] %s214_s14 }
   0xf   : > { %p1762_p9 = pneg %p2230_p8  ;;  %s2664_s16 = smov 8  }
  0x10   : > { %s2135_s17 = smov [#allocation8]   ;;  %s228_s26 = sshll.u32 %s2660_s4, 4  ;;  %s229_s26 = int_to_ptr.hbm [resolvable:$true] %s228_s26 }
  0x11   : > { %p2238_p10 = pnand %p1762_p9, %p45_p1  ;;  %s216_s18 = sshll.u32 %s2135_s17, 4  ;;  %s217_s18 = int_to_ptr.vmem [resolvable:$true] %s216_s18 }
  0x12   : > { %s2136_s29 = smov [#allocation9]   ;;  %p38_p13 = scmp.ne.s32.totalorder %s2126_s23, %s2122_s22 }
  0x13   : > { %1765 = dma.hbm_to_vmem [thread:$0]  (!%p2238_p10), %s198_s7, 512, %s200_s10, [#allocation7], %s2663_s15, %s2663_s15, %s2664_s16  }
  0x14   : > { %1768 = dma.hbm_to_vmem [thread:$0]  (!%p2238_p10), %s215_s14, 512, %s217_s18, [#allocation7], %s2663_s15, %s2663_s15, %s2664_s16  }
  0x15   : > { %s230_s30 = sshll.u32 %s2136_s29, 4  ;;  %s2260_s7 = sadd.s32 1, %s2130_s24   ;;  %s231_s30 = int_to_ptr.vmem [resolvable:$true] %s230_s30 }
  0x16   : > { %1771 = dma.hbm_to_vmem [thread:$0]  (!%p2238_p10), %s229_s26, 512, %s231_s30, [#allocation10], %s2663_s15, %s2663_s15, %s2664_s16  }
  0x17   : > { %s28_s9 = ssub.s32 %s2130_s24, %s2260_s7  ;;  %s31_s10 = sadd.s32 1, %s2126_s23 }
  0x18   : > { %p29_p12 = scmp.eq.s32.totalorder %s28_s9, 0  ;;  %p39_p0 = scmp.eq.s32.totalorder %s2130_s24, 0 }
  0x19   : > { %p2278_p3 = por %p173_p2, %p38_p13  ;;  %p1783_p5 = scmp.lt.s32.totalorder %s2130_s24, 2 }
  0x1a   : > { %s2274_s12 = scalar_select %p29_p12, %s2126_s23, %s31_s10  }
  0x1b   : > { %s247_s14 = sand.u32 1, %s2126_s23   ;;  %s1740_s11 = sshll.u32 %s2130_s24, 5 }
  0x1c   : > { %p40_p7 = por %p39_p0, %p38_p13  ;;  %s1670_s17 = sshll.u32 %s247_s14, 5 }
  0x1d   : > { %s256_s20 = scalar_lea.hbm %s2656_s0, %s1740_s11  ;;  %s251_s29 = scalar_lea.vmem [#allocation3], %s1670_s17 }
  0x1e   : > { %s257_s26 = sshll.u32 %s256_s20, 4  ;;  %s259_s30 = sshll.u32 %s251_s29, 4  ;;  %s258_s26 = int_to_ptr.hbm [resolvable:$true] %s257_s26  ;;  %s260_s30 = int_to_ptr.vmem [resolvable:$true] %s259_s30 }
  0x1f   : > { %p2288_p9 = pnand %p1783_p5, %p40_p7  ;;  %s248_s10 = scalar_lea.sflag [#allocation4], %s247_s14 }
  0x20   : > { %s2026_s15 = sshra.s32 %s258_s26, 4  ;;  %s2033_s17 = scalar_lea.hbm %s2656_s0, 64  ;;  %s2027_s15 = int_to_ptr.hbm [resolvable:$true] %s2026_s15 }
  0x21   : > { %s2028_s16 = scalar_lea.hbm %s2027_s15, 32  ;;  %p2030_p10 = pneg %p2288_p9 }
  0x22   : > { %p2029_p2 = scmp.ne.s32.totalorder %s2027_s15, %s2028_s16  ;;  %p2034_p0 = scmp.lt.s32.totalorder %s2027_s15, %s2656_s0 }
  0x23   : > { %p2035_p5 = scmp.lt.s32.totalorder %s2033_s17, %s2028_s16 }
  0x24   : > { %p2031_p12 = pnand %p2030_p10, %p2029_p2 }
  0x25   : > { %p2036_p7 = por %p2035_p5, %p2034_p0 }
  0x26   : > { %p2032_p13 = pneg %p2031_p12 }
  0x28   : > { %p2037_p11 = pnand %p2036_p7, %p2032_p13 }
  0x2a   : > { %2040 = shalt.err (!%p2037_p11)
}
  0x2b   : > { %s2671_s14 = smov 8   ;;  %s2672_s29 = smov 128  }
  0x2c   : > { %1775 = dma.hbm_to_vmem [thread:$0]  (!%p2288_p9), %s258_s26, 512, %s260_s30, %s248_s10, %s2672_s29, %s2672_s29, %s2671_s14  }
  0x2d   : > { %271 = sbr.rel (%p2230_p8) target bundleno = 1997 (0x7cd), region = 44  ;;  %s2308_s11 = sand.u32 (!%p2230_p8), 1, %s2122_s22  }
  0x2e   : > { %s1674_s15 = sshll.u32 (!%p2230_p8), %s2308_s11, 5  ;;  %s274_s16 = scalar_lea.sflag (!%p2230_p8), [#allocation4], %s2308_s11 }
  0x2f   : > { %s277_s18 = scalar_lea.vmem (!%p2230_p8), [#allocation3], %s1674_s15 }
  0x32   : > { %2101 = dma.done.wait (%p2217_p4), %s274_s16, 512  }
  0x33   : > { %2103 = vsyncadd (%p2217_p4), %s274_s16, 4294966784 }
  0x34   : > { %2105 = dma.done.wait (%p45_p1), [#allocation7], 1024  }
  0x35   : > { %2107 = vsyncadd (%p45_p1), [#allocation7], 4294966272 }
  0x36   : > { %2109 = dma.done.wait (%p45_p1), [#allocation10], 512  }
  0x37   : > { %2111 = vsyncadd (%p45_p1), [#allocation10], 4294966784  ;;  %v331_v0 = vld [vmem:[#allocation6 + $0x18] sm:$0xff]  ;;  %v330_v1 = vld [vmem:[#allocation6 + $0x10] sm:$0xff]  ;;  %vm336_vm0 = vcmask 261120   ;;  %s2137_s26 = smov 96  }
  0x38   : > { %361 = vmatpush.msra.mxu0 %v331_v0  ;;  %v329_v2 = vld [vmem:[#allocation6 + $0x8] sm:$0xff]  ;;  %v328_v3 = vld [vmem:[#allocation6] sm:$0xff]  ;;  %v326_v6 = vld [vmem:[%s277_s18 + $0x10] sm:$0xff]  ;;  %s2138_s30 = smov 88   ;;  %s2139_s9 = smov 64   ;;  %vm382_vm1 = vcmask 64512  }
  0x39   : > { %v324_v4 = vld [vmem:[%s277_s18] sm:$0xff]  ;;  %v325_v5 = vld [vmem:[%s277_s18 + $0x8] sm:$0xff]  ;;  %v327_v7 = vld [vmem:[%s277_s18 + $0x18] sm:$0xff]  ;;  %s2140_s10 = smov 120   ;;  %s2141_s17 = smov 80   ;;  %vm918_vm2 = vcmask 130112  }
  0x3a   : > { %362 = vmatpush.msra.mxu0 %v330_v1  ;;  %v1870_v8 = vld [vmem:[%s2658_s2] ss:$0 sm:$0xff]  ;;  %s2142_s19 = smov 56   ;;  %s2143_s20 = smov 112   ;;  %vm1201_vm3 = vcmask 195712   ;;  %vm1484_vm4 = vcmask 261312  }
  0x3b   : > { %v378_v34 = vld [vmem:[#allocation8] sm:$0xff]  ;;  %s2144_s14 = smov 48   ;;  %s2145_s29 = smov 72  }
  0x3c   : > { %363 = vmatpush.msra.mxu0 %v329_v2  ;;  %s2146_s16 = smov 104   ;;  %s2147_s18 = smov 40  }
  0x3d   : > { %s2148_s27 = smov 8   ;;  %s2149_s8 = smov 16  }
  0x3e   : > { %364 = vmatpush.msra.mxu0 %v328_v3 }
  0x3f   : > { %1679 = vmatmul.msk.f32.vlgmr.msra.gmra.mxu0 %vm336_vm0, %v324_v4 }
  0x47   : > { %1680 = vmatmul.msk.f32.gmra.mxu0 %vm336_vm0, %v325_v5 }
  0x4f   : > { %1681 = vmatmul.msk.f32.gmra.mxu0 %vm336_vm0, %v326_v6 }
  0x57   : > { %1682 = vmatmul.msk.f32.gmra.mxu0 %vm336_vm0, %v327_v7 }
  0xbc   : > { %v366_v9 = vpop.f32.mrf.mxu0 }
  0xbd   : > { %v2333_v10 = vadd.f32 %v1870_v8, %v366_v9 }
  0xbf   : > { %380 = vrot.lane.b32.xlu0 %v2333_v10, %s2137_s26 }
  0xc4   : > { %v369_v11 = vpop.f32.mrf.mxu0 }
  0xc5   : > { %v2339_v15 = vadd.f32 %v1870_v8, %v369_v11 }
  0xcc   : > { %v372_v12 = vpop.f32.mrf.mxu0 }
  0xcd   : > { %v2336_v13 = vadd.f32 %v1870_v8, %v372_v12 }
  0xcf   : > { %435 = vrot.lane.b32.xlu1 %v2336_v13, %s2137_s26  ;;  %v1845_v44 = vpack.i.bf16 %v2336_v13, %v2339_v15  ;;  %v1850_v51 = vpack.i.bf16 %v2339_v15, %v2336_v13 }
  0xd4   : > { %v375_v14 = vpop.f32.mrf.mxu0 }
  0xd5   : > { %v2341_v16 = vadd.f32 %v1870_v8, %v375_v14  ;;  %v641_v14 = vld [vmem:[#allocation8 + $0x8] sm:$0xff] }
  0xd7   : > { %408 = vrot.lane.b32.xlu1 %v2339_v15, %s2137_s26  ;;  %462 = vrot.lane.b32.xlu0 %v2341_v16, %s2137_s26  ;;  %v1840_v17 = vpack.i.bf16 %v2341_v16, %v2333_v10  ;;  %s2150_s26 = smov 24  }
  0xdf   : > { %700 = vrot.lane.b32.xlu1 %v2336_v13, %s2138_s30  ;;  %1841 = vrot.lane.b32.xlu0 %v1840_v17, %s2139_s9 }
  0xe7   : > { %698 = vrot.lane.b32.xlu1 %v2336_v13, %s2140_s10 }
  0xef   : > { %644 = vrot.lane.b32.xlu1 %v2333_v10, %s2138_s30 }
  0xf7   : > { %672 = vrot.lane.b32.xlu1 %v2339_v15, %s2138_s30 }
  0xff   : > { %642 = vrot.lane.b32.xlu1 %v2333_v10, %s2140_s10 }
 0x107   : > { %728 = vrot.lane.b32.xlu1 %v2341_v16, %s2138_s30  ;;  %s2076_s30 = scalar_lea.hbm %s2662_s6, 64 }
 0x10f   : > { %955 = vrot.lane.b32.xlu1 %v2339_v15, %s2141_s17 }
 0x117   : > { %1856 = vrot.lane.b32.xlu1 %v1840_v17, %s2142_s19 }
 0x131   : > { %v381_v18 = vpop.permute.xlu0 %380 }
 0x132   : > { %1683 = vmatpush.xpose.msk.msra.mxu3 %vm382_vm1, %v381_v18 }
 0x135   : > { %1684 = vmatmul.msk.f32.vlgmr.msra.gmra.mxu3 %vm382_vm1, %v2333_v10 }
 0x141   : > { %v436_v19 = vpop.permute.xlu1 %435 }
 0x142   : > { %1687 = vmatpush.xpose.msk.msrb.mxu3 %vm382_vm1, %v436_v19 }
 0x145   : > { %1688 = vmatmul.msk.f32.vlgmr.msrb.gmra.mxu3 %vm382_vm1, %v2336_v13 }
 0x149   : > { %v409_v20 = vpop.permute.xlu1 %408  ;;  %v463_v21 = vpop.permute.xlu0 %462 }
 0x14a   : > { %1685 = vmatpush.xpose.msk.msrb.mxu0 %vm382_vm1, %v409_v20  ;;  %1689 = vmatpush.xpose.msk.msra.mxu1 %vm382_vm1, %v463_v21  ;;  %v1860_v20 = vpack.i.bf16 %v2333_v10, %v2339_v15 }
 0x14d   : > { %1686 = vmatmul.msk.f32.vlgmr.msrb.gmra.mxu0 %vm382_vm1, %v2339_v15  ;;  %1690 = vmatmul.msk.f32.vlgmr.msra.gmra.mxu1 %vm382_vm1, %v2341_v16 }
 0x151   : > { %v701_v22 = vpop.permute.xlu1 %700  ;;  %v1842_v23 = vpop.permute.xlu0 %1841 }
 0x152   : > { %v1843_v24 = vunpack.i.l.bf16 %v1842_v23  ;;  %v1844_v25 = vunpack.i.h.bf16 %v1842_v23 }
 0x154   : > { %549 = vmatpush.msra.mxu2 %v1843_v24 }
 0x156   : > { %627 = vmatpush.msrb.mxu2 %v1844_v25 }
 0x159   : > { %v2371_v26 = vpop.permute.xlu1 %698 }
 0x161   : > { %v645_v27 = vpop.permute.xlu1 %644 }
 0x169   : > { %v673_v28 = vpop.permute.xlu1 %672 }
 0x171   : > { %v643_v29 = vpop.permute.xlu1 %642 }
 0x179   : > { %v729_v30 = vpop.permute.xlu1 %728 }
 0x181   : > { %v2373_v31 = vpop.permute.xlu1 %955 }
 0x189   : > { %v1857_v32 = vpop.permute.xlu1 %1856 }
 0x18a   : > { %v1859_v33 = vunpack.i.h.bf16 %v1857_v32  ;;  %v1858_v0 = vunpack.i.l.bf16 %v1857_v32 }
 0x18c   : > { %893 = vmatpush.msra.mxu0 %v1859_v33 }
 0x1b8   : > { %v404_v35 = vpop.f32.mrf.mxu3 }
 0x1b9   : > { %v405_v36 = vadd.f32 %v404_v35, %v378_v34 }
 0x1bb   : > { %v488_v37 = vsel %vm382_vm1, %v405_v36, -inf }
 0x1bc   : > { %489 = vmax.xlane.f32.xlu2 %v488_v37 }
 0x1c8   : > { %v458_v38 = vpop.f32.mrf.mxu3 }
 0x1c9   : > { %v459_v39 = vadd.f32 %v458_v38, %v378_v34 }
 0x1ca   : > { %v431_v40 = vpop.f32.mrf.mxu0  ;;  %v485_v45 = vpop.f32.mrf.mxu1 }
 0x1cb   : > { %v432_v41 = vadd.f32 %v431_v40, %v378_v34  ;;  %v494_v42 = vsel %vm382_vm1, %v459_v39, -inf  ;;  %v486_v46 = vadd.f32 %v485_v45, %v378_v34 }
 0x1cc   : > { %495 = vmax.xlane.f32.xlu0 %v494_v42 }
 0x1cd   : > { %v491_v43 = vsel %vm382_vm1, %v432_v41, -inf  ;;  %v497_v47 = vsel %vm382_vm1, %v486_v46, -inf }
 0x1ce   : > { %492 = vmax.xlane.f32.xlu2 %v491_v43 }
 0x1e0   : > { %981 = vrot.lane.b32.xlu0 %v2336_v13, %s2143_s20 }
 0x1e6   : > { %1846 = vrot.lane.b32.xlu2 %v1845_v44, %s2139_s9 }
 0x20f   : > { %498 = vmax.xlane.f32.xlu2 %v497_v47 }
 0x227   : > { %670 = vrot.lane.b32.xlu2 %v2339_v15, %s2140_s10 }
 0x22f   : > { %v490_v48 = vpop.xlane.xlu2 %489  ;;  %726 = vrot.lane.b32.xlu2 %v2341_v16, %s2140_s10  ;;  %s321_s10 = scalar_lea.vmem [#allocation11], %s1674_s15 }
 0x230   : > { %v500_v49 = vsub.f32 %v405_v36, %v490_v48 }
 0x232   : > { %v504_v50 = vmul.f32 1.442695, %v500_v49 }
 0x234   : > { %1872 = vpow2.f32 %v504_v50 }
 0x237   : > { %1851 = vrot.lane.b32.xlu2 %v1850_v51, %s2142_s19 }
 0x23a   : > { %v2391_v52 = vpop.eup %1872 }
 0x23b   : > { %1691 = vmatmul.msk.f32.vlgmr.msra.gmra.mxu2 %vm382_vm1, %v2391_v52 }
 0x23c   : > { %1699 = vmatpush.xpose.msk.msra.mxu2 %vm382_vm1, %v701_v22 }
 0x23f   : > { %983 = vrot.lane.b32.xlu2 %v2336_v13, %s2141_s17  ;;  %v496_v53 = vpop.xlane.xlu0 %495 }
 0x240   : > { %v502_v54 = vsub.f32 %v459_v39, %v496_v53 }
 0x241   : > { %v493_v55 = vpop.xlane.xlu2 %492 }
 0x242   : > { %v508_v56 = vmul.f32 1.442695, %v502_v54  ;;  %v501_v57 = vsub.f32 %v432_v41, %v493_v55 }
 0x244   : > { %v506_v58 = vmul.f32 1.442695, %v501_v57  ;;  %1874 = vpow2.f32 %v508_v56 }
 0x246   : > { %1876 = vpow2.f32 %v506_v58 }
 0x247   : > { %953 = vrot.lane.b32.xlu2 %v2339_v15, %s2143_s20 }
 0x249   : > { %v1847_v59 = vpop.permute.xlu2 %1846 }
 0x24a   : > { %v1848_v60 = vunpack.i.l.bf16 %v1847_v59  ;;  %v1849_v61 = vunpack.i.h.bf16 %v1847_v59  ;;  %v2400_v62 = vpop.eup %1874 }
 0x24c   : > { %v2402_v63 = vpop.eup %1876  ;;  %575 = vmatpush.msra.mxu3 %v1848_v60  ;;  %601 = vmatpush.msrb.mxu1 %v1849_v61 }
 0x24d   : > { %1692 = vmatmul.msk.f32.vlgmr.msra.gmra.mxu3 %vm382_vm1, %v2402_v63  ;;  %1693 = vmatmul.msk.f32.vlgmr.msrb.gmra.mxu1 %vm382_vm1, %v2400_v62 }
 0x24e   : > { %1695 = vmatpush.xpose.msk.msrb.mxu3 %vm382_vm1, %v645_v27  ;;  %1697 = vmatpush.xpose.msk.msra.mxu1 %vm382_vm1, %v673_v28 }
 0x252   : > { %1701 = vmatpush.xpose.msk.msra.mxu3 %vm382_vm1, %v729_v30  ;;  %815 = vmatpush.msrb.mxu1 %v1858_v0  ;;  %v982_v38 = vpop.permute.xlu0 %981 }
 0x255   : > { %1696 = vmatmul.msk.f32.vlgmr.msrb.gmra.mxu3 %vm382_vm1, %v643_v29 }
 0x282   : > { %v499_v1 = vpop.xlane.xlu2 %498 }
 0x283   : > { %v503_v2 = vsub.f32 %v486_v46, %v499_v1 }
 0x285   : > { %v510_v3 = vmul.f32 1.442695, %v503_v2 }
 0x287   : > { %1878 = vpow2.f32 %v510_v3 }
 0x28a   : > { %v671_v4 = vpop.permute.xlu2 %670 }
 0x28b   : > { %1698 = vmatmul.msk.f32.vlgmr.msra.gmra.mxu1 %vm382_vm1, %v671_v4  ;;  %v924_v4 = vld [vmem:[#allocation8 + $0x10] sm:$0xff] }
 0x28d   : > { %v2413_v5 = vpop.eup %1878 }
 0x28e   : > { %1694 = vmatmul.msk.f32.vlgmr.msrb.gmra.mxu2 %vm382_vm1, %v2413_v5 }
 0x292   : > { %v727_v6 = vpop.permute.xlu2 %726 }
 0x293   : > { %1702 = vmatmul.msk.f32.vlgmr.msra.gmra.mxu3 %vm382_vm1, %v727_v6 }
 0x296   : > { %1700 = vmatmul.msk.f32.vlgmr.msra.gmra.mxu2 %vm382_vm1, %v2371_v26 }
 0x29a   : > { %v1852_v7 = vpop.permute.xlu2 %1851 }
 0x29b   : > { %v1854_v8 = vunpack.i.h.bf16 %v1852_v7  ;;  %v1853_v9 = vunpack.i.l.bf16 %v1852_v7 }
 0x29d   : > { %841 = vmatpush.msrb.mxu2 %v1854_v8  ;;  %867 = vmatpush.msrb.mxu3 %v1853_v9 }
 0x29f   : > { %1709 = vmatpush.xpose.msk.msra.mxu2 %vm382_vm1, %v2373_v31 }
 0x2a2   : > { %v984_v11 = vpop.permute.xlu2 %983 }
 0x2a3   : > { %1711 = vmatpush.xpose.msk.msra.mxu3 %vm382_vm1, %v984_v11 }
 0x2aa   : > { %v954_v33 = vpop.permute.xlu2 %953 }
 0x2be   : > { %v2435_v23 = vpop.f32.mrf.mxu2 }
 0x2ca   : > { %v2431_v21 = vpop.f32.mrf.mxu1 }
 0x2d0   : > { %v2423_v12 = vpop.f32.mrf.mxu3 }
 0x2d8   : > { %v667_v17 = vpop.f32.mrf.mxu3 }
 0x2d9   : > { %v668_v18 = vadd.f32 %v667_v17, %v641_v14 }
 0x2db   : > { %v754_v19 = vsel %vm382_vm1, %v668_v18, -inf }
 0x2dc   : > { %755 = vmax.xlane.f32.xlu2 %v754_v19 }
 0x2f4   : > { %925 = vrot.lane.b32.xlu2 %v2333_v10, %s2143_s20 }
 0x2fc   : > { %1861 = vrot.lane.b32.xlu2 %v1860_v20, %s2144_s14 }
 0x304   : > { %1210 = vrot.lane.b32.xlu2 %v2333_v10, %s2145_s29 }
 0x308   : > { %v695_v22 = vpop.f32.mrf.mxu1 }
 0x309   : > { %v696_v24 = vadd.f32 %v695_v22, %v641_v14 }
 0x30b   : > { %v757_v25 = vsel %vm382_vm1, %v696_v24, -inf }
 0x30c   : > { %758 = vmax.xlane.f32.xlu0 %v757_v25 }
 0x311   : > { %v2438_v26 = vpop.f32.mrf.mxu2 }
 0x316   : > { %v751_v27 = vpop.f32.mrf.mxu3 }
 0x317   : > { %v752_v28 = vadd.f32 %v751_v27, %v641_v14 }
 0x319   : > { %v723_v29 = vpop.f32.mrf.mxu2  ;;  %v763_v30 = vsel %vm382_vm1, %v752_v28, -inf }
 0x31a   : > { %v724_v31 = vadd.f32 %v723_v29, %v641_v14  ;;  %764 = vmax.xlane.f32.xlu0 %v763_v30 }
 0x31c   : > { %v760_v32 = vsel %vm382_vm1, %v724_v31, -inf }
 0x31d   : > { %761 = vmax.xlane.f32.xlu1 %v760_v32 }
 0x32e   : > { %927 = vrot.lane.b32.xlu0 %v2333_v10, %s2141_s17 }
 0x336   : > { %1264 = vrot.lane.b32.xlu0 %v2336_v13, %s2146_s16  ;;  %1011 = vrot.lane.b32.xlu1 %v2341_v16, %s2141_s17  ;;  %s1741_s17 = sshll.u32 %s2208_s25, 5  ;;  %s1547_s25 = scalar_lea.sflag [#allocation5], %s2308_s11 }
 0x33e   : > { %1238 = vrot.lane.b32.xlu0 %v2339_v15, %s2145_s29  ;;  %1009 = vrot.lane.b32.xlu1 %v2341_v16, %s2143_s20 }
 0x346   : > { %1236 = vrot.lane.b32.xlu0 %v2339_v15, %s2146_s16  ;;  %1129 = vrot.lane.b32.xlu1 %v2336_v13, %s2144_s14 }
 0x34e   : > { %1266 = vrot.lane.b32.xlu1 %v2336_v13, %s2145_s29 }
 0x34f   : > { %v756_v34 = vpop.xlane.xlu2 %755 }
 0x350   : > { %v766_v35 = vsub.f32 %v668_v18, %v756_v34 }
 0x352   : > { %v770_v36 = vmul.f32 1.442695, %v766_v35 }
 0x354   : > { %1880 = vpow2.f32 %v770_v36 }
 0x356   : > { %1155 = vrot.lane.b32.xlu1 %v2341_v16, %s2144_s14  ;;  %s1558_s14 = scalar_lea.hbm %s2662_s6, %s1741_s17 }
 0x357   : > { %v926_v39 = vpop.permute.xlu2 %925 }
 0x35a   : > { %v2460_v37 = vpop.eup %1880 }
 0x35b   : > { %1703 = vmatmul.msk.f32.vlgmr.msrb.gmra.mxu1 %vm382_vm1, %v2460_v37 }
 0x35f   : > { %v1862_v43 = vpop.permute.xlu2 %1861 }
 0x360   : > { %v1863_v45 = vunpack.i.l.bf16 %v1862_v43  ;;  %v1864_v55 = vunpack.i.h.bf16 %v1862_v43 }
 0x367   : > { %v1211_v57 = vpop.permute.xlu2 %1210 }
 0x37f   : > { %v759_v40 = vpop.xlane.xlu0 %758 }
 0x380   : > { %v767_v41 = vsub.f32 %v696_v24, %v759_v40 }
 0x382   : > { %v772_v42 = vmul.f32 1.442695, %v767_v41 }
 0x384   : > { %1882 = vpow2.f32 %v772_v42 }
 0x38a   : > { %v2464_v44 = vpop.eup %1882 }
 0x38b   : > { %1704 = vmatmul.msk.f32.vlgmr.msrb.gmra.mxu2 %vm382_vm1, %v2464_v44 }
 0x38c   : > { %1124 = vmatpush.msrb.mxu2 %v1863_v45 }
 0x38d   : > { %v765_v46 = vpop.xlane.xlu0 %764 }
 0x38e   : > { %v769_v47 = vsub.f32 %v752_v28, %v765_v46 }
 0x390   : > { %v776_v48 = vmul.f32 1.442695, %v769_v47  ;;  %v762_v49 = vpop.xlane.xlu1 %761 }
 0x391   : > { %v768_v50 = vsub.f32 %v724_v31, %v762_v49 }
 0x392   : > { %1884 = vpow2.f32 %v776_v48 }
 0x393   : > { %v774_v51 = vmul.f32 1.442695, %v768_v50  ;;  %1710 = vmatmul.msk.f32.vlgmr.msra.gmra.mxu2 %vm382_vm1, %v954_v33 }
 0x395   : > { %1886 = vpow2.f32 %v774_v51 }
 0x398   : > { %v2469_v53 = vpop.eup %1884 }
 0x399   : > { %1706 = vmatmul.msk.f32.vlgmr.msra.gmra.mxu0 %vm382_vm1, %v2469_v53 }
 0x39b   : > { %v2473_v54 = vpop.eup %1886 }
 0x39c   : > { %1705 = vmatmul.msk.f32.vlgmr.msrb.gmra.mxu3 %vm382_vm1, %v2473_v54 }
 0x3a0   : > { %v928_v56 = vpop.permute.xlu0 %927 }
 0x3a1   : > { %1707 = vmatpush.xpose.msk.msra.mxu1 %vm382_vm1, %v928_v56 }
 0x3a4   : > { %1708 = vmatmul.msk.f32.vlgmr.msra.gmra.mxu1 %vm382_vm1, %v926_v39  ;;  %1712 = vmatmul.msk.f32.vlgmr.msra.gmra.mxu3 %vm382_vm1, %v982_v38 }
 0x3a5   : > { %1098 = vmatpush.msrb.mxu1 %v1864_v55  ;;  %v1207_v55 = vld [vmem:[#allocation8 + $0x18] sm:$0xff] }
 0x3a7   : > { %1719 = vmatpush.xpose.msk.msra.mxu1 %vm382_vm1, %v1211_v57 }
 0x3a8   : > { %v2481_v58 = vpop.permute.xlu0 %1264  ;;  %v1012_v59 = vpop.permute.xlu1 %1011 }
 0x3a9   : > { %1713 = vmatpush.xpose.msk.msrb.mxu0 %vm382_vm1, %v1012_v59 }
 0x3b0   : > { %v1239_v60 = vpop.permute.xlu0 %1238  ;;  %v1010_v61 = vpop.permute.xlu1 %1009 }
 0x3b1   : > { %1714 = vmatmul.msk.f32.vlgmr.msrb.gmra.mxu0 %vm382_vm1, %v1010_v61  ;;  %1721 = vmatpush.xpose.msk.msra.mxu2 %vm382_vm1, %v1239_v60 }
 0x3b8   : > { %v1130_v0 = vpop.permute.xlu1 %1129  ;;  %v1237_v29 = vpop.permute.xlu0 %1236 }
 0x3b9   : > { %1150 = vmatpush.msrb.mxu3 %v1130_v0 }
 0x3c0   : > { %v1267_v1 = vpop.permute.xlu1 %1266 }
 0x3c1   : > { %1723 = vmatpush.xpose.msk.msra.mxu3 %vm382_vm1, %v1267_v1 }
 0x3c8   : > { %v1156_v2 = vpop.permute.xlu1 %1155 }
 0x3c9   : > { %1176 = vmatpush.msra.mxu0 %v1156_v2 }
 0x3d8   : > { %v2489_v8 = vpop.f32.mrf.mxu1 }
 0x40e   : > { %v2487_v3 = vpop.f32.mrf.mxu2 }
 0x416   : > { %v978_v6 = vpop.f32.mrf.mxu2  ;;  %v2493_v18 = vpop.f32.mrf.mxu0 }
 0x417   : > { %v979_v7 = vadd.f32 %v978_v6, %v924_v4 }
 0x419   : > { %v1040_v9 = vsel %vm382_vm1, %v979_v7, -inf }
 0x41a   : > { %1041 = vmax.xlane.f32.xlu0 %v1040_v9  ;;  %v784_v9 = vsel %vm382_vm1, %v2473_v54, 0.0 }
 0x41f   : > { %v2495_v19 = vpop.f32.mrf.mxu3 }
 0x421   : > { %v950_v11 = vpop.f32.mrf.mxu1 }
 0x422   : > { %v951_v14 = vadd.f32 %v950_v11, %v924_v4 }
 0x424   : > { %v1037_v17 = vsel %vm382_vm1, %v951_v14, -inf }
 0x425   : > { %1038 = vmax.xlane.f32.xlu1 %v1037_v17 }
 0x427   : > { %v1006_v25 = vpop.f32.mrf.mxu3 }
 0x428   : > { %v1007_v27 = vadd.f32 %v1006_v25, %v924_v4  ;;  %v781_v25 = vsel %vm382_vm1, %v2464_v44, 0.0  ;;  %v512_v44 = vsel %vm382_vm1, %v2391_v52, 0.0 }
 0x42a   : > { %v1043_v28 = vsel %vm382_vm1, %v1007_v27, -inf }
 0x42e   : > { %1294 = vrot.lane.b32.xlu0 %v2341_v16, %s2145_s29  ;;  %v1034_v20 = vpop.f32.mrf.mxu0  ;;  %s1559_s29 = sshll.u32 %s321_s10, 4  ;;  %s1560_s29 = int_to_ptr.vmem [resolvable:$true] %s1559_s29 }
 0x42f   : > { %v1035_v22 = vadd.f32 %v1034_v20, %v924_v4  ;;  %v1865_v20 = vpack.i.bf16 %v2339_v15, %v2333_v10  ;;  %v521_v15 = vsel %vm382_vm1, %v2413_v5, 0.0 }
 0x431   : > { %v1046_v24 = vsel %vm382_vm1, %v1035_v22, -inf }
 0x432   : > { %1047 = vmax.xlane.f32.xlu2 %v1046_v24 }
 0x43a   : > { %1044 = vmax.xlane.f32.xlu2 %v1043_v28 }
 0x43e   : > { %1292 = vrot.lane.b32.xlu1 %v2341_v16, %s2146_s16 }
 0x452   : > { %1208 = vrot.lane.b32.xlu2 %v2333_v10, %s2146_s16  ;;  %v518_v10 = vsel %vm382_vm1, %v2400_v62, 0.0  ;;  %s1561_s16 = sshll.u32 %s1558_s14, 4  ;;  %s1562_s16 = int_to_ptr.hbm [resolvable:$true] %s1561_s16 }
 0x453   : > { %s2070_s15 = sshra.s32 %s1562_s16, 4  ;;  %s2071_s15 = int_to_ptr.hbm [resolvable:$true] %s2070_s15 }
 0x454   : > { %p2077_p11 = scmp.lt.s32.totalorder %s2071_s15, %s2662_s6 }
 0x45a   : > { %1412 = vrot.lane.b32.xlu2 %v2336_v13, %s2147_s18 }
 0x48d   : > { %v1042_v30 = vpop.xlane.xlu0 %1041 }
 0x48e   : > { %v1050_v31 = vsub.f32 %v979_v7, %v1042_v30 }
 0x490   : > { %v1055_v32 = vmul.f32 1.442695, %v1050_v31 }
 0x492   : > { %1888 = vpow2.f32 %v1055_v32 }
 0x498   : > { %v2507_v33 = vpop.eup %1888  ;;  %v1039_v34 = vpop.xlane.xlu1 %1038 }
 0x499   : > { %v1049_v35 = vsub.f32 %v951_v14, %v1039_v34  ;;  %1716 = vmatmul.msk.f32.vlgmr.msrb.gmra.mxu2 %vm382_vm1, %v2507_v33 }
 0x49b   : > { %v1053_v36 = vmul.f32 1.442695, %v1049_v35 }
 0x49d   : > { %1890 = vpow2.f32 %v1053_v36 }
 0x4a0   : > { %v1295_v38 = vpop.permute.xlu0 %1294 }
 0x4a1   : > { %1722 = vmatmul.msk.f32.vlgmr.msra.gmra.mxu2 %vm382_vm1, %v1237_v29  ;;  %1725 = vmatpush.xpose.msk.msrb.mxu0 %vm382_vm1, %v1295_v38 }
 0x4a3   : > { %v1891_v13 = vpop.eup %1890 }
 0x4a4   : > { %1715 = vmatmul.msk.f32.vlgmr.msrb.gmra.mxu1 %vm382_vm1, %v1891_v13  ;;  %v1061_v24 = vsel %vm382_vm1, %v1891_v13, 0.0 }
 0x4a5   : > { %v1048_v39 = vpop.xlane.xlu2 %1047 }
 0x4a6   : > { %v1052_v40 = vsub.f32 %v1035_v22, %v1048_v39 }
 0x4a8   : > { %v1059_v41 = vmul.f32 1.442695, %v1052_v40 }
 0x4aa   : > { %1892 = vpow2.f32 %v1059_v41 }
 0x4ad   : > { %v1045_v42 = vpop.xlane.xlu2 %1044 }
 0x4ae   : > { %v1051_v43 = vsub.f32 %v1007_v27, %v1045_v42  ;;  %v1064_v27 = vsel %vm382_vm1, %v2507_v33, 0.0 }
 0x4b0   : > { %v1893_v45 = vpop.eup %1892  ;;  %v1057_v46 = vmul.f32 1.442695, %v1051_v43  ;;  %v1293_v49 = vpop.permute.xlu1 %1292 }
 0x4b1   : > { %1718 = vmatmul.msk.f32.vlgmr.msra.gmra.mxu0 %vm382_vm1, %v1893_v45  ;;  %v1070_v54 = vsel %vm382_vm1, %v1893_v45, 0.0 }
 0x4b2   : > { %1894 = vpow2.f32 %v1057_v46 }
 0x4b5   : > { %v1209_v47 = vpop.permute.xlu2 %1208 }
 0x4b6   : > { %1720 = vmatmul.msk.f32.vlgmr.msra.gmra.mxu1 %vm382_vm1, %v1209_v47 }
 0x4b8   : > { %v1895_v48 = vpop.eup %1894 }
 0x4b9   : > { %1717 = vmatmul.msk.f32.vlgmr.msrb.gmra.mxu3 %vm382_vm1, %v1895_v48  ;;  %1726 = vmatmul.msk.f32.vlgmr.msrb.gmra.mxu0 %vm382_vm1, %v1293_v49  ;;  %v1067_v22 = vsel %vm382_vm1, %v1895_v48, 0.0 }
 0x4bd   : > { %v1413_v50 = vpop.permute.xlu2 %1412 }
 0x4be   : > { %1433 = vmatpush.msrb.mxu3 %v1413_v50 }
 0x4c1   : > { %1724 = vmatmul.msk.f32.vlgmr.msra.gmra.mxu3 %vm382_vm1, %v2481_v58 }
 0x51c   : > { %v2520_v51 = vpop.f32.mrf.mxu2 }
 0x521   : > { %v2523_v60 = vpop.f32.mrf.mxu1 }
 0x524   : > { %v1261_v56 = vpop.f32.mrf.mxu2 }
 0x525   : > { %v1262_v57 = vadd.f32 %v1261_v56, %v1207_v55 }
 0x527   : > { %v1323_v59 = vsel %vm382_vm1, %v1262_v57, -inf }
 0x528   : > { %1324 = vmax.xlane.f32.xlu2 %v1323_v59 }
 0x52e   : > { %v2525_v61 = vpop.f32.mrf.mxu0 }
 0x533   : > { %v1233_v0 = vpop.f32.mrf.mxu1 }
 0x534   : > { %v1234_v1 = vadd.f32 %v1233_v0, %v1207_v55 }
 0x536   : > { %v1317_v2 = vpop.f32.mrf.mxu0  ;;  %v1320_v4 = vsel %vm382_vm1, %v1234_v1, -inf }
 0x537   : > { %v1318_v6 = vadd.f32 %v1317_v2, %v1207_v55  ;;  %1321 = vmax.xlane.f32.xlu1 %v1320_v4  ;;  %v515_v4 = vsel %vm382_vm1, %v2402_v63, 0.0 }
 0x539   : > { %v1329_v58 = vsel %vm382_vm1, %v1318_v6, -inf }
 0x53a   : > { %1330 = vmax.xlane.f32.xlu0 %v1329_v58 }
 0x53c   : > { %v2529_v7 = vpop.f32.mrf.mxu3 }
 0x540   : > { %1438 = vrot.lane.b32.xlu2 %v2341_v16, %s2147_s18  ;;  %v787_v16 = vsel %vm382_vm1, %v2469_v53, 0.0  ;;  %v778_v53 = vsel %vm382_vm1, %v2460_v37, 0.0 }
 0x542   : > { %785 = vadd.xlane.f32.xlu0 %v784_v9 }
 0x544   : > { %v1289_v11 = vpop.f32.mrf.mxu3 }
 0x545   : > { %v1290_v14 = vadd.f32 %v1289_v11, %v1207_v55 }
 0x547   : > { %v1326_v17 = vsel %vm382_vm1, %v1290_v14, -inf }
 0x54a   : > { %1327 = vmax.xlane.f32.xlu0 %v1326_v17 }
 0x550   : > { %1866 = vrot.lane.b32.xlu1 %v1865_v20, %s2147_s18  ;;  %s2072_s18 = scalar_lea.hbm %s2071_s15, 32 }
 0x551   : > { %p2073_p1 = scmp.ne.s32.totalorder %s2071_s15, %s2072_s18  ;;  %p2078_p9 = scmp.lt.s32.totalorder %s2076_s30, %s2072_s18 }
 0x552   : > { %1068 = vadd.xlane.f32.xlu0 %v1067_v22 }
 0x553   : > { %p2074_p4 = pnand %p2073_p1, %p2278_p3  ;;  %p2079_p2 = por %p2078_p9, %p2077_p11 }
 0x555   : > { %p2075_p8 = pneg %p2074_p4 }
 0x557   : > { %p2080_p10 = pnand %p2079_p2, %p2075_p8 }
 0x55a   : > { %788 = vadd.xlane.f32.xlu0 %v787_v16 }
 0x562   : > { %1071 = vadd.xlane.f32.xlu0 %v1070_v54 }
 0x569   : > { %1062 = vadd.xlane.f32.xlu2 %v1061_v24 }
 0x56a   : > { %782 = vadd.xlane.f32.xlu0 %v781_v25 }
 0x571   : > { %519 = vadd.xlane.f32.xlu2 %v518_v10 }
 0x572   : > { %522 = vadd.xlane.f32.xlu0 %v521_v15 }
 0x57a   : > { %779 = vadd.xlane.f32.xlu1 %v778_v53 }
 0x582   : > { %1065 = vadd.xlane.f32.xlu1 %v1064_v27 }
 0x58a   : > { %513 = vadd.xlane.f32.xlu1 %v512_v44 }
 0x59b   : > { %v1325_v28 = vpop.xlane.xlu2 %1324 }
 0x59c   : > { %v1333_v34 = vsub.f32 %v1262_v57, %v1325_v28 }
 0x59e   : > { %v1338_v33 = vmul.f32 1.442695, %v1333_v34 }
 0x5a3   : > { %v1439_v29 = vpop.permute.xlu2 %1438 }
 0x5a4   : > { %1459 = vmatpush.msra.mxu0 %v1439_v29 }
 0x5aa   : > { %v1322_v5 = vpop.xlane.xlu1 %1321 }
 0x5ab   : > { %v1332_v37 = vsub.f32 %v1234_v1, %v1322_v5 }
 0x5ad   : > { %v1331_v62 = vpop.xlane.xlu0 %1330  ;;  %v1336_v52 = vmul.f32 1.442695, %v1332_v37 }
 0x5ae   : > { %v1335_v30 = vsub.f32 %v1318_v6, %v1331_v62 }
 0x5b0   : > { %v1342_v31 = vmul.f32 1.442695, %v1335_v30 }
 0x5b2   : > { %1896 = vpow2.f32 %v1342_v31 }
 0x5b5   : > { %v786_v32 = vpop.xlane.xlu0 %785 }
 0x5b6   : > { %1898 = vrcp.f32 %v786_v32 }
 0x5b7   : > { %1900 = vpow2.f32 %v1338_v33 }
 0x5b8   : > { %v2556_v35 = vpop.eup %1896  ;;  %1902 = vpow2.f32 %v1336_v52 }
 0x5b9   : > { %1730 = vmatmul.msk.f32.vlgmr.msra.gmra.mxu0 %vm382_vm1, %v2556_v35  ;;  %v1353_v54 = vsel %vm382_vm1, %v2556_v35, 0.0 }
 0x5bc   : > { %v1899_v36 = vpop.eup %1898 }
 0x5bd   : > { %v1328_v38 = vpop.xlane.xlu0 %1327  ;;  %v900_v13 = vmul.f32 %v1899_v36, %v2495_v19  ;;  %v1901_v45 = vpop.eup %1900 }
 0x5be   : > { %v1334_v39 = vsub.f32 %v1290_v14, %v1328_v38  ;;  %v1903_v46 = vpop.eup %1902 }
 0x5bf   : > { %910 = vrot.lane.b32.xlu2 %v900_v13, %s2148_s27 }
 0x5c0   : > { %v1340_v40 = vmul.f32 1.442695, %v1334_v39 }
 0x5c2   : > { %1904 = vpow2.f32 %v1340_v40  ;;  %v1867_v41 = vpop.permute.xlu1 %1866 }
 0x5c3   : > { %v1869_v42 = vunpack.i.h.bf16 %v1867_v41  ;;  %v1868_v43 = vunpack.i.l.bf16 %v1867_v41 }
 0x5c5   : > { %v1069_v47 = vpop.xlane.xlu0 %1068  ;;  %1381 = vmatpush.msrb.mxu1 %v1868_v43  ;;  %1407 = vmatpush.msrb.mxu2 %v1869_v42 }
 0x5c6   : > { %1906 = vrcp.f32 %v1069_v47  ;;  %1727 = vmatmul.msk.f32.vlgmr.msrb.gmra.mxu1 %vm382_vm1, %v1903_v46  ;;  %1728 = vmatmul.msk.f32.vlgmr.msrb.gmra.mxu2 %vm382_vm1, %v1901_v45  ;;  %v1494_v47 = vld [vmem:[#allocation9 + $0x8] sm:$0xff] }
 0x5c8   : > { %v1905_v19 = vpop.eup %1904 }
 0x5c9   : > { %1729 = vmatmul.msk.f32.vlgmr.msrb.gmra.mxu3 %vm382_vm1, %v1905_v19  ;;  %v1350_v24 = vsel %vm382_vm1, %v1905_v19, 0.0  ;;  %v1493_v19 = vld [vmem:[#allocation9] sm:$0xff] }
 0x5cc   : > { %v1907_v48 = vpop.eup %1906 }
 0x5cd   : > { %v789_v49 = vpop.xlane.xlu0 %788  ;;  %v1183_v50 = vmul.f32 %v1907_v48, %v2529_v7 }
 0x5cf   : > { %1193 = vrot.lane.b32.xlu1 %v1183_v50, %s2149_s8 }
 0x5d5   : > { %v1072_v55 = vpop.xlane.xlu0 %1071 }
 0x5dc   : > { %v1063_v56 = vpop.xlane.xlu2 %1062 }
 0x5dd   : > { %1908 = vrcp.f32 %v1063_v56  ;;  %v2567_v57 = vpop.xlane.xlu0 %782 }
 0x5e3   : > { %v1909_v59 = vpop.eup %1908 }
 0x5e4   : > { %v520_v0 = vpop.xlane.xlu2 %519  ;;  %v1181_v1 = vmul.f32 %v1909_v59, %v2523_v60 }
 0x5e5   : > { %1910 = vrcp.f32 %v520_v0  ;;  %v523_v2 = vpop.xlane.xlu0 %522 }
 0x5e6   : > { %1912 = vrcp.f32 %v523_v2  ;;  %1189 = vrot.lane.b32.xlu1 %v1181_v1, %s2149_s8  ;;  %v1871_v2 = vld [vmem:[%s2661_s5] ss:$0 sm:$0xff] }
 0x5e8   : > { %516 = vadd.xlane.f32.xlu2 %v515_v4 }
 0x5eb   : > { %v1911_v6 = vpop.eup %1910 }
 0x5ec   : > { %v1913_v58 = vpop.eup %1912  ;;  %v634_v7 = vmul.f32 %v1911_v6, %v2431_v21 }
 0x5ed   : > { %v635_v9 = vmul.f32 %v1913_v58, %v2438_v26  ;;  %v780_v11 = vpop.xlane.xlu1 %779 }
 0x5ee   : > { %638 = vst.msk [vmem:[#allocation2 + $0x10] sm:$0xff] %vm382_vm1, %v634_v7  ;;  %1914 = vrcp.f32 %v780_v11 }
 0x5ef   : > { %639 = vst.msk [vmem:[#allocation2 + $0x18] sm:$0xff] %vm382_vm1, %v635_v9  ;;  %1916 = vrcp.f32 %v789_v49 }
 0x5f4   : > { %v1915_v60 = vpop.eup %1914 }
 0x5f5   : > { %v1066_v14 = vpop.xlane.xlu1 %1065  ;;  %v898_v17 = vmul.f32 %v1915_v60, %v2489_v8  ;;  %v1917_v63 = vpop.eup %1916  ;;  %v1344_v8 = vsel %vm382_vm1, %v1903_v46, 0.0  ;;  %v1495_v46 = vld [vmem:[#allocation9 + $0x10] sm:$0xff] }
 0x5f6   : > { %v901_v22 = vmul.f32 %v1917_v63, %v2493_v18  ;;  %v1347_v18 = vsel %vm382_vm1, %v1901_v45, 0.0  ;;  %v1496_v45 = vld [vmem:[#allocation9 + $0x18] sm:$0xff] }
 0x5f7   : > { %906 = vrot.lane.b32.xlu0 %v898_v17, %s2148_s27  ;;  %1525 = vmatpush.msra.mxu1 %v1496_v45 }
 0x5f8   : > { %1742 = vmatpush.msra.mxu2 %v1496_v45 }
 0x5f9   : > { %1526 = vmatpush.msra.mxu1 %v1495_v46 }
 0x5fa   : > { %1743 = vmatpush.msra.mxu2 %v1495_v46 }
 0x5fb   : > { %1527 = vmatpush.msra.mxu1 %v1494_v47 }
 0x5fc   : > { %1744 = vmatpush.msra.mxu2 %v1494_v47 }
 0x5fd   : > { %v514_v20 = vpop.xlane.xlu1 %513  ;;  %1528 = vmatpush.msra.mxu1 %v1493_v19 }
 0x5fe   : > { %1918 = vrcp.f32 %v514_v20  ;;  %1745 = vmatpush.msra.mxu2 %v1493_v19 }
 0x5ff   : > { %912 = vrot.lane.b32.xlu0 %v901_v22, %s2148_s27  ;;  %1920 = vrcp.f32 %v1072_v55 }
 0x604   : > { %v1919_v21 = vpop.eup %1918 }
 0x605   : > { %v632_v26 = vmul.f32 %v1919_v21, %v2435_v23  ;;  %v1921_v25 = vpop.eup %1920 }
 0x606   : > { %v1184_v10 = vmul.f32 %v1921_v25, %v2525_v61 }
 0x607   : > { %636 = vst.msk [vmem:[#allocation2] sm:$0xff] %vm382_vm1, %v632_v26 }
 0x619   : > { %v911_v16 = vpop.permute.xlu2 %910 }
 0x61a   : > { %921 = vst.msk [vmem:[#allocation2 + $0x10] sm:$0xff] %vm918_vm2, %v911_v16 }
 0x629   : > { %1345 = vadd.xlane.f32.xlu0 %v1344_v8 }
 0x631   : > { %1354 = vadd.xlane.f32.xlu0 %v1353_v54 }
 0x636   : > { %v1461_v32 = vpop.f32.mrf.mxu0 }
 0x639   : > { %1348 = vadd.xlane.f32.xlu0 %v1347_v18 }
 0x641   : > { %1351 = vadd.xlane.f32.xlu0 %v1350_v24  ;;  %v1194_v23 = vpop.permute.xlu1 %1193 }
 0x642   : > { %1204 = vst.msk [vmem:[#allocation2 + $0x10] sm:$0xff] %vm1201_vm3, %v1194_v23 }
 0x643   : > { %v1383_v30 = vpop.f32.mrf.mxu1 }
 0x64c   : > { %v1435_v38 = vpop.f32.mrf.mxu3 }
 0x655   : > { %1195 = vrot.lane.b32.xlu0 %v1184_v10, %s2149_s8 }
 0x658   : > { %v1190_v28 = vpop.permute.xlu1 %1189 }
 0x65b   : > { %v517_v15 = vpop.xlane.xlu2 %516 }
 0x65c   : > { %1922 = vrcp.f32 %v517_v15 }
 0x662   : > { %v1923_v53 = vpop.eup %1922 }
 0x663   : > { %v633_v27 = vmul.f32 %v1923_v53, %v2423_v12 }
 0x665   : > { %637 = vst.msk [vmem:[#allocation2 + $0x8] sm:$0xff] %vm382_vm1, %v633_v27 }
 0x669   : > { %v907_v44 = vpop.permute.xlu0 %906 }
 0x66a   : > { %919 = vst.msk [vmem:[#allocation2] sm:$0xff] %vm918_vm2, %v907_v44 }
 0x66b   : > { %1202 = vst.msk [vmem:[#allocation2] sm:$0xff] %vm1201_vm3, %v1190_v28 }
 0x671   : > { %v913_v29 = vpop.permute.xlu0 %912 }
 0x672   : > { %922 = vst.msk [vmem:[#allocation2 + $0x18] sm:$0xff] %vm918_vm2, %v913_v29 }
 0x69c   : > { %v1346_v62 = vpop.xlane.xlu0 %1345 }
 0x69d   : > { %1924 = vrcp.f32 %v1346_v62 }
 0x6a3   : > { %v1925_v61 = vpop.eup %1924 }
 0x6a4   : > { %v1355_v31 = vpop.xlane.xlu0 %1354  ;;  %v1464_v5 = vmul.f32 %v1925_v61, %v1383_v30 }
 0x6a5   : > { %1926 = vrcp.f32 %v1355_v31 }
 0x6a6   : > { %1472 = vrot.lane.b32.xlu1 %v1464_v5, %s2150_s26  ;;  %1928 = vrcp.f32 %v1066_v14 }
 0x6ab   : > { %v1927_v12 = vpop.eup %1926 }
 0x6ac   : > { %v1349_v34 = vpop.xlane.xlu0 %1348  ;;  %v1467_v37 = vmul.f32 %v1927_v12, %v1461_v32  ;;  %v1929_v35 = vpop.eup %1928 }
 0x6ad   : > { %v1182_v52 = vmul.f32 %v1929_v35, %v2520_v51  ;;  %v1409_v51 = vpop.f32.mrf.mxu2 }
 0x6ae   : > { %1478 = vrot.lane.b32.xlu1 %v1467_v37, %s2150_s26 }
 0x6b4   : > { %v1352_v33 = vpop.xlane.xlu0 %1351 }
 0x6b5   : > { %1930 = vrcp.f32 %v1352_v33 }
 0x6b6   : > { %1191 = vrot.lane.b32.xlu1 %v1182_v52, %s2149_s8  ;;  %1932 = vrcp.f32 %v2567_v57 }
 0x6b7   : > { %1934 = vrcp.f32 %v1349_v34 }
 0x6bb   : > { %v1931_v36 = vpop.eup %1930 }
 0x6bc   : > { %v1466_v13 = vmul.f32 %v1931_v36, %v1435_v38  ;;  %v1933_v39 = vpop.eup %1932 }
 0x6bd   : > { %v899_v40 = vmul.f32 %v1933_v39, %v2487_v3  ;;  %v1935_v42 = vpop.eup %1934 }
 0x6be   : > { %1476 = vrot.lane.b32.xlu0 %v1466_v13, %s2150_s26  ;;  %v1465_v43 = vmul.f32 %v1935_v42, %v1409_v51 }
 0x6c6   : > { %908 = vrot.lane.b32.xlu0 %v899_v40, %s2148_s27 }
 0x6c7   : > { %v1196_v41 = vpop.permute.xlu0 %1195 }
 0x6c8   : > { %1205 = vst.msk [vmem:[#allocation2 + $0x18] sm:$0xff] %vm1201_vm3, %v1196_v41 }
 0x6ce   : > { %1474 = vrot.lane.b32.xlu0 %v1465_v43, %s2150_s26 }
 0x718   : > { %v1473_v3 = vpop.permute.xlu1 %1472 }
 0x719   : > { %1485 = vst.msk [vmem:[#allocation2] sm:$0xff] %vm1484_vm4, %v1473_v3 }
 0x720   : > { %v1479_v48 = vpop.permute.xlu1 %1478  ;;  %v1489_v49 = vld [vmem:[#allocation2] sm:$0xff] }
 0x721   : > { %1488 = vst.msk [vmem:[#allocation2 + $0x18] sm:$0xff] %vm1484_vm4, %v1479_v48  ;;  %1731 = vmatmul.msk.f32.vlgmr.msra.gmra.mxu1 %vm336_vm0, %v1489_v49 }
 0x728   : > { %v1192_v57 = vpop.permute.xlu1 %1191  ;;  %v1492_v0 = vld [vmem:[#allocation2 + $0x18] sm:$0xff] }
 0x730   : > { %v1477_v50 = vpop.permute.xlu0 %1476 }
 0x731   : > { %1487 = vst.msk [vmem:[#allocation2 + $0x10] sm:$0xff] %vm1484_vm4, %v1477_v50 }
 0x738   : > { %v909_v55 = vpop.permute.xlu0 %908  ;;  %v1491_v56 = vld [vmem:[#allocation2 + $0x10] sm:$0xff] }
 0x739   : > { %920 = vst.msk [vmem:[#allocation2 + $0x8] sm:$0xff] %vm918_vm2, %v909_v55  ;;  %1733 = vmatmul.msk.f32.vlgmr.msra.gmra.mxu2 %vm336_vm0, %v1491_v56 }
 0x73a   : > { %1203 = vst.msk [vmem:[#allocation2 + $0x8] sm:$0xff] %vm1201_vm3, %v1192_v57 }
 0x740   : > { %v1475_v59 = vpop.permute.xlu0 %1474 }
 0x741   : > { %1486 = vst.msk [vmem:[#allocation2 + $0x8] sm:$0xff] %vm1484_vm4, %v1475_v59  ;;  %1734 = vmatmul.msk.f32.gmra.mxu2 %vm336_vm0, %v1492_v0 }
 0x748   : > { %v1490_v1 = vld [vmem:[#allocation2 + $0x8] sm:$0xff] }
 0x749   : > { %1732 = vmatmul.msk.f32.gmra.mxu1 %vm336_vm0, %v1490_v1 }
 0x79e   : > { %v1530_v4 = vpop.f32.mrf.mxu1 }
 0x79f   : > { %v1531_v6 = vadd.f32 %v1871_v2, %v1530_v4 }
 0x7a1   : > { %1542 = vst.msk [vmem:[%s321_s10] sm:$0xff] %vm336_vm0, %v1531_v6 }
 0x7bc   : > { %v1536_v58 = vpop.f32.mrf.mxu2 }
 0x7bd   : > { %v1537_v7 = vadd.f32 %v1871_v2, %v1536_v58 }
 0x7bf   : > { %1544 = vst.msk [vmem:[%s321_s10 + $0x10] sm:$0xff] %vm336_vm0, %v1537_v7 }
 0x7c4   : > { %v1539_v9 = vpop.f32.mrf.mxu2 }
 0x7c5   : > { %v1540_v11 = vadd.f32 %v1871_v2, %v1539_v9 }
 0x7c6   : > { %v1533_v60 = vpop.f32.mrf.mxu1 }
 0x7c7   : > { %1545 = vst.msk [vmem:[%s321_s10 + $0x18] sm:$0xff] %vm336_vm0, %v1540_v11  ;;  %v1534_v14 = vadd.f32 %v1871_v2, %v1533_v60 }
 0x7c9   : > { %1543 = vst.msk [vmem:[%s321_s10 + $0x8] sm:$0xff] %vm336_vm0, %v1534_v14 }
 0x7ca   : > { %2083 = shalt.err (!%p2080_p10)
}
 0x7cb   : > { %s2151_s11 = smov 128  }
 0x7cc   : > { %1760 = dma.vmem_to_hbm [thread:$0]  (%p2278_p3), %s1560_s29, 512, %s1562_s16, %s1547_s25, %s2151_s11, %s2151_s11, %s2148_s27  }
 0x7cd PF: > { %s1576_s10 = sand.u32 1, %s2118_s21   ;;  %p2673_p12 = scmp.ge.s32.totalorder %s2130_s24, 2 }
 0x7ce   : > { %s1577_s19 = scalar_lea.sflag [#allocation5], %s1576_s10 }
 0x7cf   : > { %p1777_p13 = pnand %p2673_p12, %p2222_p6 }
 0x7d1   : > { %p1778_p0 = pneg %p1777_p13 }
 0x7d3   : > { %2113 = dma.done.wait (%p1778_p0), %s1577_s19, 512  }
 0x7d4   : > { %2115 = vsyncadd (%p1778_p0), %s1577_s19, 4294966784  ;;  %p21_p5 = scmp.ge.s32.totalorder %s2260_s7, 4   ;;  %s2674_s21 = smov %s2122_s22 }
 0x7d5   : > { %s2675_s22 = smov %s2126_s23  ;;  %s2676_s23 = smov %s2274_s12 }
 0x7d6   : > { %s2677_s24 = smov %s2260_s7  ;;  %23 = sbr.rel (!%p21_p5) target bundleno = 7 (0x7), region = 104 }
 0x7db   :  { %1583 = vsyncpa [#allocation4], 1 }
 0x7dc   :  { %1585 = vsyncpa [#allocation4 + $0x1], 1 }
 0x7dd   :  { %1586 = vsyncpa [#allocation7], 1 }
 0x7de   :  { %1587 = vsyncpa [#allocation10], 1 }
 0x7df   :  { %1588 = vsyncpa [#allocation5], 1 }
 0x7e0   :  { %1590 = vsyncpa [#allocation5 + $0x1], 1 }

</bundles_post_ra>
